<compile_context>
chip_gen: v6e
topology: v6e:2x2x1
jax: 0.10.0
libtpu: 0.0.40
codegen_flags: <defaults>
</compile_context>

<pallas_src>
import jax
import jax.numpy as jnp
from jax.experimental import pallas as pl
from jax.experimental.pallas import tpu as pltpu


def _round_up(x, m):
    return ((x + m - 1) // m) * m


def _pick_tile(dim_padded, cap, step):
    """Largest multiple of `step` that is <= cap and divides dim_padded."""
    t = min(cap, dim_padded)
    t -= t % step
    t = max(t, step)
    while dim_padded % t:
        t -= step
    return t


def _fused_ae_latent_kernel(x_ref, w1_ref, b1_ref, w2_ref, b2_ref,
                            lat_ref, unlat_ref):
    """latent = x @ w1 + b1 ; unlat = latent @ w2 + b2  (one grid step).

    x_ref:     [tm, K ]  flattened encoder features
    w1_ref:    [K , L ]  latent weight, pre-transposed to [in, out]
    b1_ref:    [1 , L ]
    w2_ref:    [L , K2]  unlatent weight, pre-transposed to [in, out]
    b2_ref:    [1 , K2]
    lat_ref:   [tm, L ]  output: mu (returned by WM_AE as `latent`)
    unlat_ref: [tm, K2]  output: unlatent activations (pre-unflatten/decoder)
    """
    w1 = w1_ref[...]
    lat = jnp.dot(x_ref[...].astype(w1.dtype), w1,
                  preferred_element_type=jnp.float32)
    lat = lat + b1_ref[...].astype(jnp.float32)
    lat_ref[...] = lat.astype(lat_ref.dtype)

    w2 = w2_ref[...]
    unlat = jnp.dot(lat.astype(w2.dtype), w2,
                    preferred_element_type=jnp.float32)
    unlat = unlat + b2_ref[...].astype(jnp.float32)
    unlat_ref[...] = unlat.astype(unlat_ref.dtype)


def prepare_wm_ae_latent_params(w_mu, b_mu, w_unl, b_unl, compute_dtype=None):
    """One-time parameter prep (do NOT call per forward).

    Transposes PyTorch [out, in] weights to MXU-canonical [in, out] layout,
    reshapes biases to [1, out], and optionally casts the weights once to a
    lower precision (e.g. jnp.bfloat16) to halve the HBM weight stream.
    Biases stay f32 (added to the f32 accumulator).
    """
    wd = compute_dtype if compute_dtype is not None else jnp.asarray(w_mu).dtype
    return dict(
        w1t=jnp.asarray(w_mu).T.astype(wd),                     # [input, latent]
        b1=jnp.asarray(b_mu).reshape(1, -1).astype(jnp.float32),
        w2t=jnp.asarray(w_unl).T.astype(wd),                    # [latent, input]
        b2=jnp.asarray(b_unl).reshape(1, -1).astype(jnp.float32),
    )


def wm_ae_latent_path(x, params, *, tm_cap=256, out_dtype=None):
    """Fused AELatent + unlatent forward.

    x:      [B, C, H, W] encoder output (flattened internally, like torch.flatten(x, 1))
    params: dict from prepare_wm_ae_latent_params
    Returns (latent [B, latent_size], unlatent [B, input_size]).
    """
    B = x.shape[0]
    x2d = x.reshape(B, -1)                 # row-major flatten == torch.flatten(x, 1)
    M, K = x2d.shape
    w1t, b1, w2t, b2 = params["w1t"], params["b1"], params["w2t"], params["b2"]
    assert w1t.shape[0] == K, "input_size mismatch"
    L = w1t.shape[1]                       # latent_size
    assert w2t.shape[0] == L
    K2 = w2t.shape[1]                      # unlatent output size
    out_dtype = out_dtype or x.dtype

    # Single grid step per batch tile. For small batches the block dim equals the
    # true M (legal, no (8,128) pad); only large batches are padded/tiled.
    if M <= tm_cap:
        Mp, tm, xp = M, M, x2d
    else:
        Mp = _round_up(M, 8)
        tm = _pick_tile(Mp, tm_cap, 8)
        xp = jnp.pad(x2d, ((0, Mp - M), (0, 0))) if Mp != M else x2d

    grid = (Mp // tm,)

    lat, unlat = pl.pallas_call(
        _fused_ae_latent_kernel,
        out_shape=(jax.ShapeDtypeStruct((Mp, L), out_dtype),
                   jax.ShapeDtypeStruct((Mp, K2), out_dtype)),
        grid_spec=pltpu.PrefetchScalarGridSpec(
            num_scalar_prefetch=0,
            grid=grid,
            in_specs=[
                pl.BlockSpec((tm, K), lambda i: (i, 0)),    # x tile
                pl.BlockSpec((K, L), lambda i: (0, 0)),     # w1t (full weight)
                pl.BlockSpec((1, L), lambda i: (0, 0)),     # b1
                pl.BlockSpec((L, K2), lambda i: (0, 0)),    # w2t (full weight)
                pl.BlockSpec((1, K2), lambda i: (0, 0)),    # b2
            ],
            out_specs=[
                pl.BlockSpec((tm, L), lambda i: (i, 0)),    # latent
                pl.BlockSpec((tm, K2), lambda i: (i, 0)),   # unlatent
            ],
        ),
        compiler_params=pltpu.CompilerParams(
            dimension_semantics=("parallel",),   # batch tiles are independent
            vmem_limit_bytes=32 * 1024 * 1024,   # actual use ~5 MB; fits all gens
        ),
    )(xp, w1t, b1, w2t, b2)

    if Mp != M:
        lat, unlat = lat[:M], unlat[:M]
    return lat, unlat


if __name__ == "__main__":
    # Shapes consistent with WM_AE: the encoder's last conv has 256 channels and a
    # 2x2 spatial map, so flatten gives input_size = 256*2*2 = 1024; latent = 256.
    B, C, H, W = 2, 256, 2, 2
    input_size = C * H * W          # 1024
    latent_size = 256

    key = jax.random.PRNGKey(0)
    k_x, k_w, k_b, k_uw, k_ub = jax.random.split(key, 5)

    x = jax.random.normal(k_x, (B, C, H, W), dtype=jnp.float32)

    # nn.Linear-style parameters (PyTorch layout: weight [out, in], bias [out]).
    bound = 1.0 / jnp.sqrt(jnp.float32(input_size))
    w_lat = jax.random.uniform(k_w, (latent_size, input_size), dtype=jnp.float32,
                               minval=-bound, maxval=bound)
    b_lat = jax.random.uniform(k_b, (latent_size,), dtype=jnp.float32,
                               minval=-bound, maxval=bound)

    bound_u = 1.0 / jnp.sqrt(jnp.float32(latent_size))
    w_unl = jax.random.uniform(k_uw, (input_size, latent_size), dtype=jnp.float32,
                               minval=-bound_u, maxval=bound_u)
    b_unl = jax.random.uniform(k_ub, (input_size,), dtype=jnp.float32,
                               minval=-bound_u, maxval=bound_u)

    # One-time weight relayout (transpose to [in, out]); keep f32 here so the
    # reference check stays tight.  For production, pass
    # compute_dtype=jnp.bfloat16 to halve the weight HBM stream.
    params = prepare_wm_ae_latent_params(w_lat, b_lat, w_unl, b_unl)

    latent, unlat = wm_ae_latent_path(x, params)
    latent = jax.block_until_ready(latent)
    unlat = jax.block_until_ready(unlat)

    # Reference (plain JAX, PyTorch nn.Linear semantics).
    ref_lat = x.reshape(B, -1) @ w_lat.T + b_lat
    ref_unl = ref_lat @ w_unl.T + b_unl

    assert latent.shape == (B, latent_size)
    assert unlat.shape == (B, input_size)
    assert jnp.allclose(latent, ref_lat, atol=1e-5, rtol=1e-5)
    assert jnp.allclose(unlat, ref_unl, atol=1e-4, rtol=1e-4)

    print("KERNEL_OK")
</pallas_src>

<mosaic_0001>
module attributes {stable_mosaic.version = 11 : i64} {
  func.func @_fused_ae_latent_kernel(%arg0: i32, %arg1: memref<2x1024xf32, #tpu.memory_space<vmem>>, %arg2: memref<1024x256xf32, #tpu.memory_space<vmem>>, %arg3: memref<1x256xf32, #tpu.memory_space<vmem>>, %arg4: memref<256x1024xf32, #tpu.memory_space<vmem>>, %arg5: memref<1x1024xf32, #tpu.memory_space<vmem>>, %arg6: memref<2x256xf32, #tpu.memory_space<vmem>>, %arg7: memref<2x1024xf32, #tpu.memory_space<vmem>>) attributes {dimension_semantics = [#tpu.dimension_semantics<parallel>], iteration_bounds = array<i64: 1>, scalar_prefetch = 0 : i64, scratch_operands = 0 : i64, tpu.core_type = #tpu.core_type<tc>, window_params = [{transform_indices = @transform_0, window_bounds = array<i64: 2, 1024>}, {pipeline_mode = #tpu.pipeline_mode<synchronous>, transform_indices = @transform_1, window_bounds = array<i64: 1024, 256>}, {pipeline_mode = #tpu.pipeline_mode<synchronous>, transform_indices = @transform_2, window_bounds = array<i64: 1, 256>}, {pipeline_mode = #tpu.pipeline_mode<synchronous>, transform_indices = @transform_3, window_bounds = array<i64: 256, 1024>}, {pipeline_mode = #tpu.pipeline_mode<synchronous>, transform_indices = @transform_4, window_bounds = array<i64: 1, 1024>}, {transform_indices = @transform_5, window_bounds = array<i64: 2, 256>}, {transform_indices = @transform_6, window_bounds = array<i64: 2, 1024>}]} {
    %c0 = arith.constant 0 : index
    %c0_0 = arith.constant 0 : index
    %0 = vector.load %arg2[%c0, %c0_0] : memref<1024x256xf32, #tpu.memory_space<vmem>>, vector<1024x256xf32>
    %c0_1 = arith.constant 0 : index
    %c0_2 = arith.constant 0 : index
    %1 = vector.load %arg1[%c0_1, %c0_2] : memref<2x1024xf32, #tpu.memory_space<vmem>>, vector<2x1024xf32>
    %cst = arith.constant dense<0.000000e+00> : vector<2x256xf32>
    %2 = tpu.matmul %1, %0, %cst {dimension_numbers = #tpu.dot_dimension_numbers<[1], [0], [0], [1], [0, 0, 1, 1], [], []>} : vector<2x1024xf32>, vector<1024x256xf32>, vector<2x256xf32> -> vector<2x256xf32>
    %c0_3 = arith.constant 0 : index
    %c0_4 = arith.constant 0 : index
    %3 = vector.load %arg3[%c0_3, %c0_4] : memref<1x256xf32, #tpu.memory_space<vmem>>, vector<1x256xf32>
    %4 = vector.broadcast %3 : vector<1x256xf32> to vector<2x256xf32>
    %5 = arith.addf %2, %4 : vector<2x256xf32>
    %c0_5 = arith.constant 0 : index
    %c0_6 = arith.constant 0 : index
    %6 = vector.load %arg6[%c0_5, %c0_6] : memref<2x256xf32, #tpu.memory_space<vmem>>, vector<2x256xf32>
    tpu.vector_store %arg6[%c0_5, %c0_6], %5 {strides = array<i32>} : memref<2x256xf32, #tpu.memory_space<vmem>>, vector<2x256xf32>,
    %c0_7 = arith.constant 0 : index
    %c0_8 = arith.constant 0 : index
    %7 = vector.load %arg4[%c0_7, %c0_8] : memref<256x1024xf32, #tpu.memory_space<vmem>>, vector<256x1024xf32>
    %cst_9 = arith.constant dense<0.000000e+00> : vector<2x1024xf32>
    %8 = tpu.matmul %5, %7, %cst_9 {dimension_numbers = #tpu.dot_dimension_numbers<[1], [0], [0], [1], [0, 0, 1, 1], [], []>} : vector<2x256xf32>, vector<256x1024xf32>, vector<2x1024xf32> -> vector<2x1024xf32>
    %c0_10 = arith.constant 0 : index
    %c0_11 = arith.constant 0 : index
    %9 = vector.load %arg5[%c0_10, %c0_11] : memref<1x1024xf32, #tpu.memory_space<vmem>>, vector<1x1024xf32>
    %10 = vector.broadcast %9 : vector<1x1024xf32> to vector<2x1024xf32>
    %11 = arith.addf %8, %10 : vector<2x1024xf32>
    %c0_12 = arith.constant 0 : index
    %c0_13 = arith.constant 0 : index
    %12 = vector.load %arg7[%c0_12, %c0_13] : memref<2x1024xf32, #tpu.memory_space<vmem>>, vector<2x1024xf32>
    tpu.vector_store %arg7[%c0_12, %c0_13], %11 {strides = array<i32>} : memref<2x1024xf32, #tpu.memory_space<vmem>>, vector<2x1024xf32>,
    return
  }
  func.func @transform_0(%arg0: i32) -> (i32, i32) {
    %c0_i32 = arith.constant 0 : i32
    %c0_i32_0 = arith.constant 0 : i32
    return %arg0, %c0_i32 : i32, i32
  }
  func.func @transform_1(%arg0: i32) -> (i32, i32) {
    %c0_i32 = arith.constant 0 : i32
    %c0_i32_0 = arith.constant 0 : i32
    %c0_i32_1 = arith.constant 0 : i32
    return %c0_i32, %c0_i32_0 : i32, i32
  }
  func.func @transform_2(%arg0: i32) -> (i32, i32) {
    %c0_i32 = arith.constant 0 : i32
    %c0_i32_0 = arith.constant 0 : i32
    %c0_i32_1 = arith.constant 0 : i32
    return %c0_i32, %c0_i32_0 : i32, i32
  }
  func.func @transform_3(%arg0: i32) -> (i32, i32) {
    %c0_i32 = arith.constant 0 : i32
    %c0_i32_0 = arith.constant 0 : i32
    %c0_i32_1 = arith.constant 0 : i32
    return %c0_i32, %c0_i32_0 : i32, i32
  }
  func.func @transform_4(%arg0: i32) -> (i32, i32) {
    %c0_i32 = arith.constant 0 : i32
    %c0_i32_0 = arith.constant 0 : i32
    %c0_i32_1 = arith.constant 0 : i32
    return %c0_i32, %c0_i32_0 : i32, i32
  }
  func.func @transform_5(%arg0: i32) -> (i32, i32) {
    %c0_i32 = arith.constant 0 : i32
    %c0_i32_0 = arith.constant 0 : i32
    return %arg0, %c0_i32 : i32, i32
  }
  func.func @transform_6(%arg0: i32) -> (i32, i32) {
    %c0_i32 = arith.constant 0 : i32
    %c0_i32_0 = arith.constant 0 : i32
    return %arg0, %c0_i32 : i32, i32
  }
}

</mosaic_0001>

<bundles_post_ra>
// kernel: tpu_custom_call.1
= control target key start
LH: loop header
LB: loop body
LE: loop exit
PB: predicated region body
PF: predicated region fallthrough
CT: control target
= control target key end

     0   :  { %12 = vsyncpa [#allocation3], 0  ;;  %s1591_s0 = inlined_call_operand.hbm [shape: f32[2,1024], index: 0, kind: input, shape index: {}]   ;;  %s1592_s1 = inlined_call_operand.hbm [shape: f32[1024,256], index: 1, kind: input, shape index: {}]   ;;  %s1593_s2 = inlined_call_operand.vmem [shape: f32[1,256], index: 2, kind: input, shape index: {}]   ;;  %s1594_s3 = inlined_call_operand.hbm [shape: f32[256,1024], index: 3, kind: input, shape index: {}]   ;;  %s1595_s4 = inlined_call_operand.hbm [shape: f32[1,1024], index: 4, kind: input, shape index: {}]   ;;  %s1596_s5 = inlined_call_operand.hbm [shape: f32[2,256], index: 5, kind: output, shape index: {0}]   ;;  %s1597_s6 = inlined_call_operand.hbm [shape: f32[2,1024], index: 6, kind: output, shape index: {1}]  }
   0x1   :  { %13 = vsyncpa [#allocation6], 0 }
   0x2   :  { %14 = vsyncpa [#allocation9], 0 }
   0x3   :  { %15 = vsyncpa [#allocation4], 0 }
   0x4   :  { %16 = vsyncpa [#allocation12], 0  ;;  %s1488_s21 = smov [#allocation5]  }
   0x5   :  { %s32_s22 = sshll.u32 %s1488_s21, 4  ;;  %s33_s22 = int_to_ptr.vmem [resolvable:$true] %s32_s22 }
   0x6   :  { %s1366_s23 = scalar_lea.vmem %s33_s22, 32768  ;;  %p1371_p1 = scmp.lt.s32.totalorder %s33_s22, %s33_s22 }
   0x7   :  { %p1367_p0 = scmp.ne.s32.totalorder %s33_s22, %s1366_s23  ;;  %p1372_p2 = scmp.lt.s32.totalorder %s1366_s23, %s1366_s23 }
   0x9   :  { %p1373_p3 = por %p1372_p2, %p1371_p1 }
   0xb   :  { %p1374_p4 = pnand %p1373_p3, %p1367_p0 }
   0xd   :  { %1377 = shalt.err (!%p1374_p4)
}
   0xe   :  { %s1489_s24 = smov 256   ;;  %s1490_s25 = smov 16  }
   0xf   :  { %38 = dma.hbm_to_vmem [thread:$0]  %s1592_s1, 32768, %s33_s22, [#allocation6], %s1489_s24, %s1489_s24, %s1490_s25  }
  0x10   :  { %s1491_s28 = smov [#allocation2]   ;;  %s1492_s30 = smov [#allocation7]  }
  0x11   :  { %s23_s29 = sshll.u32 %s1491_s28, 4  ;;  %s46_s7 = sshll.u32 %s1492_s30, 4  ;;  %s24_s29 = int_to_ptr.vmem [resolvable:$true] %s23_s29  ;;  %s47_s7 = int_to_ptr.vmem [resolvable:$true] %s46_s7 }
  0x12   :  { %s1386_s8 = scalar_lea.vmem %s24_s29, 256  ;;  %p1391_p6 = scmp.lt.s32.totalorder %s24_s29, %s24_s29 }
  0x13   :  { %p1387_p5 = scmp.ne.s32.totalorder %s24_s29, %s1386_s8  ;;  %p1392_p7 = scmp.lt.s32.totalorder %s1386_s8, %s1386_s8 }
  0x15   :  { %p1393_p8 = por %p1392_p7, %p1391_p6 }
  0x17   :  { %p1394_p9 = pnand %p1393_p8, %p1387_p5 }
  0x19   :  { %1397 = shalt.err (!%p1394_p9)
}
  0x1a   :  { %26 = dma.hbm_to_vmem [thread:$0]  %s1591_s0, 256, %s24_s29, [#allocation3]  }
  0x1b   :  { %s1406_s11 = scalar_lea.vmem %s47_s7, 32768  ;;  %p1411_p11 = scmp.lt.s32.totalorder %s47_s7, %s47_s7 }
  0x1c   :  { %p1407_p10 = scmp.ne.s32.totalorder %s47_s7, %s1406_s11  ;;  %p1412_p12 = scmp.lt.s32.totalorder %s1406_s11, %s1406_s11 }
  0x1e   :  { %p1413_p13 = por %p1412_p12, %p1411_p11 }
  0x20   :  { %p1414_p0 = pnand %p1413_p13, %p1407_p10 }
  0x22   :  { %1417 = shalt.err (!%p1414_p0)
}
  0x23   :  { %s1493_s1 = smov 1024   ;;  %s1494_s12 = smov 64  }
  0x24   :  { %52 = dma.hbm_to_vmem [thread:$0]  %s1594_s3, 32768, %s47_s7, [#allocation6], %s1493_s1, %s1493_s1, %s1494_s12  }
  0x25   :  { %s1495_s15 = smov [#allocation8]  }
  0x26   :  { %s59_s16 = sshll.u32 %s1495_s15, 4  ;;  %s60_s16 = int_to_ptr.vmem [resolvable:$true] %s59_s16 }
  0x27   :  { %s1426_s17 = scalar_lea.vmem %s60_s16, 128  ;;  %p1431_p2 = scmp.lt.s32.totalorder %s60_s16, %s60_s16 }
  0x28   :  { %p1427_p1 = scmp.ne.s32.totalorder %s60_s16, %s1426_s17  ;;  %p1432_p3 = scmp.lt.s32.totalorder %s1426_s17, %s1426_s17 }
  0x2a   :  { %p1433_p4 = por %p1432_p3, %p1431_p2 }
  0x2c   :  { %p1434_p5 = pnand %p1433_p4, %p1427_p1 }
  0x2e   :  { %1437 = shalt.err (!%p1434_p5)
}
  0x2f   :  { %62 = dma.hbm_to_vmem [thread:$0]  %s1595_s4, 128, %s60_s16, [#allocation9]  }
  0x30   :  { %1478 = dma.done.wait [#allocation3], 256  }
  0x31   :  { %1479 = vsyncadd [#allocation3], 4294967040 }
  0x32   :  { %1480 = dma.done.wait [#allocation6], 65536  }
  0x33   :  { %1481 = vsyncadd [#allocation6], 4294901760 }
  0x34   :  { %1482 = dma.done.wait [#allocation9], 128  }
  0x35   :  { %1483 = vsyncadd [#allocation9], 4294967168  ;;  %v106_v0 = vld [vmem:[#allocation5 + $0xf8] sm:$0xff]  ;;  %v105_v2 = vld [vmem:[#allocation5 + $0xf0] sm:$0xff] }
  0x36   :  { %v170_v1 = vld [vmem:[#allocation5 + $0x2f8] sm:$0xff]  ;;  %389 = vmatprep.subr.mxu0 %v106_v0  ;;  %v169_v3 = vld [vmem:[#allocation5 + $0x2f0] sm:$0xff]  ;;  %v104_v4 = vld [vmem:[#allocation5 + $0xe8] sm:$0xff] }
  0x37   :  { %460 = vmatprep.subr.mxu1 %v170_v1  ;;  %v168_v5 = vld [vmem:[#allocation5 + $0x2e8] sm:$0xff]  ;;  %390 = vmatpush1.msra.mxu0 %v105_v2  ;;  %v103_v6 = vld [vmem:[#allocation5 + $0xe0] sm:$0xff]  ;;  %v102_v8 = vld [vmem:[#allocation5 + $0xd8] sm:$0xff] }
  0x38   :  { %461 = vmatpush1.msra.mxu1 %v169_v3  ;;  %v167_v7 = vld [vmem:[#allocation5 + $0x2e0] sm:$0xff]  ;;  %391 = vmatprep.subr.mxu0 %v104_v4  ;;  %v166_v9 = vld [vmem:[#allocation5 + $0x2d8] sm:$0xff]  ;;  %v101_v10 = vld [vmem:[#allocation5 + $0xd0] sm:$0xff] }
  0x39   :  { %462 = vmatprep.subr.mxu1 %v168_v5  ;;  %v165_v11 = vld [vmem:[#allocation5 + $0x2d0] sm:$0xff]  ;;  %392 = vmatpush1.msra.mxu0 %v103_v6  ;;  %v100_v12 = vld [vmem:[#allocation5 + $0xc8] sm:$0xff]  ;;  %v99_v14 = vld [vmem:[#allocation5 + $0xc0] sm:$0xff] }
  0x3a   :  { %463 = vmatpush1.msra.mxu1 %v167_v7  ;;  %v164_v13 = vld [vmem:[#allocation5 + $0x2c8] sm:$0xff]  ;;  %393 = vmatprep.subr.mxu0 %v102_v8  ;;  %v163_v15 = vld [vmem:[#allocation5 + $0x2c0] sm:$0xff]  ;;  %v98_v16 = vld [vmem:[#allocation5 + $0xb8] sm:$0xff] }
  0x3b   :  { %464 = vmatprep.subr.mxu1 %v166_v9  ;;  %394 = vmatpush1.msra.mxu0 %v101_v10  ;;  %v162_v17 = vld [vmem:[#allocation5 + $0x2b8] sm:$0xff]  ;;  %v97_v18 = vld [vmem:[#allocation5 + $0xb0] sm:$0xff]  ;;  %v96_v20 = vld [vmem:[#allocation5 + $0xa8] sm:$0xff] }
  0x3c   :  { %465 = vmatpush1.msra.mxu1 %v165_v11  ;;  %395 = vmatprep.subr.mxu0 %v100_v12  ;;  %v161_v19 = vld [vmem:[#allocation5 + $0x2b0] sm:$0xff]  ;;  %v160_v21 = vld [vmem:[#allocation5 + $0x2a8] sm:$0xff]  ;;  %v95_v22 = vld [vmem:[#allocation5 + $0xa0] sm:$0xff] }
  0x3d   :  { %466 = vmatprep.subr.mxu1 %v164_v13  ;;  %396 = vmatpush1.msra.mxu0 %v99_v14  ;;  %v159_v23 = vld [vmem:[#allocation5 + $0x2a0] sm:$0xff]  ;;  %v94_v24 = vld [vmem:[#allocation5 + $0x98] sm:$0xff]  ;;  %v93_v26 = vld [vmem:[#allocation5 + $0x90] sm:$0xff] }
  0x3e   :  { %467 = vmatpush1.msra.mxu1 %v163_v15  ;;  %397 = vmatprep.subr.mxu0 %v98_v16  ;;  %v158_v25 = vld [vmem:[#allocation5 + $0x298] sm:$0xff]  ;;  %v157_v27 = vld [vmem:[#allocation5 + $0x290] sm:$0xff]  ;;  %v92_v28 = vld [vmem:[#allocation5 + $0x88] sm:$0xff] }
  0x3f   :  { %468 = vmatprep.subr.mxu1 %v162_v17  ;;  %398 = vmatpush1.msra.mxu0 %v97_v18  ;;  %v156_v29 = vld [vmem:[#allocation5 + $0x288] sm:$0xff]  ;;  %v91_v30 = vld [vmem:[#allocation5 + $0x80] sm:$0xff]  ;;  %v90_v32 = vld [vmem:[#allocation5 + $0x78] sm:$0xff] }
  0x40   :  { %469 = vmatpush1.msra.mxu1 %v161_v19  ;;  %399 = vmatprep.subr.mxu0 %v96_v20  ;;  %v155_v31 = vld [vmem:[#allocation5 + $0x280] sm:$0xff]  ;;  %v154_v33 = vld [vmem:[#allocation5 + $0x278] sm:$0xff]  ;;  %v89_v34 = vld [vmem:[#allocation5 + $0x70] sm:$0xff] }
  0x41   :  { %470 = vmatprep.subr.mxu1 %v160_v21  ;;  %400 = vmatpush1.msra.mxu0 %v95_v22  ;;  %v153_v35 = vld [vmem:[#allocation5 + $0x270] sm:$0xff]  ;;  %v88_v36 = vld [vmem:[#allocation5 + $0x68] sm:$0xff]  ;;  %v87_v38 = vld [vmem:[#allocation5 + $0x60] sm:$0xff] }
  0x42   :  { %471 = vmatpush1.msra.mxu1 %v159_v23  ;;  %401 = vmatprep.subr.mxu0 %v94_v24  ;;  %v152_v37 = vld [vmem:[#allocation5 + $0x268] sm:$0xff]  ;;  %v151_v39 = vld [vmem:[#allocation5 + $0x260] sm:$0xff]  ;;  %v86_v40 = vld [vmem:[#allocation5 + $0x58] sm:$0xff] }
  0x43   :  { %472 = vmatprep.subr.mxu1 %v158_v25  ;;  %402 = vmatpush1.msra.mxu0 %v93_v26  ;;  %v150_v41 = vld [vmem:[#allocation5 + $0x258] sm:$0xff]  ;;  %v85_v42 = vld [vmem:[#allocation5 + $0x50] sm:$0xff]  ;;  %v84_v44 = vld [vmem:[#allocation5 + $0x48] sm:$0xff] }
  0x44   :  { %473 = vmatpush1.msra.mxu1 %v157_v27  ;;  %403 = vmatprep.subr.mxu0 %v92_v28  ;;  %v149_v43 = vld [vmem:[#allocation5 + $0x250] sm:$0xff]  ;;  %v148_v45 = vld [vmem:[#allocation5 + $0x248] sm:$0xff]  ;;  %v83_v46 = vld [vmem:[#allocation5 + $0x40] sm:$0xff] }
  0x45   :  { %474 = vmatprep.subr.mxu1 %v156_v29  ;;  %404 = vmatpush1.msra.mxu0 %v91_v30  ;;  %v147_v47 = vld [vmem:[#allocation5 + $0x240] sm:$0xff]  ;;  %v82_v48 = vld [vmem:[#allocation5 + $0x38] sm:$0xff]  ;;  %v81_v50 = vld [vmem:[#allocation5 + $0x30] sm:$0xff]  ;;  %v335_v30 = vlaneseq }
  0x46   :  { %475 = vmatpush1.msra.mxu1 %v155_v31  ;;  %405 = vmatprep.subr.mxu0 %v90_v32  ;;  %v146_v49 = vld [vmem:[#allocation5 + $0x238] sm:$0xff]  ;;  %v145_v51 = vld [vmem:[#allocation5 + $0x230] sm:$0xff]  ;;  %v80_v52 = vld [vmem:[#allocation5 + $0x28] sm:$0xff]  ;;  %v1496_v31 = vmov 1983009808  }
  0x47   :  { %476 = vmatprep.subr.mxu1 %v154_v33  ;;  %406 = vmatpush1.msra.mxu0 %v89_v34  ;;  %v144_v53 = vld [vmem:[#allocation5 + $0x228] sm:$0xff]  ;;  %v79_v54 = vld [vmem:[#allocation5 + $0x20] sm:$0xff]  ;;  %v78_v56 = vld [vmem:[#allocation5 + $0x18] sm:$0xff]  ;;  %v349_v32 = vunpack.c.l.s4 %v1496_v31 }
  0x48   :  { %477 = vmatpush1.msra.mxu1 %v153_v35  ;;  %407 = vmatprep.subr.mxu0 %v88_v36  ;;  %v143_v55 = vld [vmem:[#allocation5 + $0x220] sm:$0xff]  ;;  %v142_v57 = vld [vmem:[#allocation5 + $0x218] sm:$0xff]  ;;  %v77_v58 = vld [vmem:[#allocation5 + $0x10] sm:$0xff] }
  0x49   :  { %478 = vmatprep.subr.mxu1 %v152_v37  ;;  %408 = vmatpush1.msra.mxu0 %v87_v38  ;;  %v141_v59 = vld [vmem:[#allocation5 + $0x210] sm:$0xff]  ;;  %v76_v60 = vld [vmem:[#allocation5 + $0x8] sm:$0xff]  ;;  %v75_v62 = vld [vmem:[#allocation5] sm:$0xff] }
  0x4a   :  { %479 = vmatpush1.msra.mxu1 %v151_v39  ;;  %409 = vmatprep.subr.mxu0 %v86_v40  ;;  %v140_v61 = vld [vmem:[#allocation5 + $0x208] sm:$0xff]  ;;  %v139_v63 = vld [vmem:[#allocation5 + $0x200] sm:$0xff]  ;;  %v138_v0 = vld [vmem:[#allocation5 + $0x1f8] sm:$0xff] }
  0x4b   :  { %480 = vmatprep.subr.mxu1 %v150_v41  ;;  %410 = vmatpush1.msra.mxu0 %v85_v42  ;;  %v202_v1 = vld [vmem:[#allocation5 + $0x3f8] sm:$0xff]  ;;  %v137_v2 = vld [vmem:[#allocation5 + $0x1f0] sm:$0xff]  ;;  %v136_v4 = vld [vmem:[#allocation5 + $0x1e8] sm:$0xff]  ;;  %v1546_v41 = vshrl.u32 %v335_v30, 7  ;;  %v350_v42 = vunpack.c.0.s8 %v349_v32 }
  0x4c   :  { %481 = vmatpush1.msra.mxu1 %v149_v43  ;;  %411 = vmatprep.subr.mxu0 %v84_v44  ;;  %v201_v3 = vld [vmem:[#allocation5 + $0x3f0] sm:$0xff]  ;;  %v200_v5 = vld [vmem:[#allocation5 + $0x3e8] sm:$0xff]  ;;  %v135_v6 = vld [vmem:[#allocation5 + $0x1e0] sm:$0xff] }
  0x4d   :  { %482 = vmatprep.subr.mxu1 %v148_v45  ;;  %412 = vmatpush1.msra.mxu0 %v83_v46  ;;  %v199_v7 = vld [vmem:[#allocation5 + $0x3e0] sm:$0xff]  ;;  %v134_v8 = vld [vmem:[#allocation5 + $0x1d8] sm:$0xff]  ;;  %v133_v10 = vld [vmem:[#allocation5 + $0x1d0] sm:$0xff] }
  0x4e   :  { %483 = vmatpush1.msra.mxu1 %v147_v47  ;;  %413 = vmatprep.subr.mxu0 %v82_v48  ;;  %v198_v9 = vld [vmem:[#allocation5 + $0x3d8] sm:$0xff]  ;;  %v197_v11 = vld [vmem:[#allocation5 + $0x3d0] sm:$0xff]  ;;  %v132_v12 = vld [vmem:[#allocation5 + $0x1c8] sm:$0xff] }
  0x4f   :  { %484 = vmatprep.subr.mxu1 %v146_v49  ;;  %414 = vmatpush1.msra.mxu0 %v81_v50  ;;  %v196_v13 = vld [vmem:[#allocation5 + $0x3c8] sm:$0xff]  ;;  %v131_v14 = vld [vmem:[#allocation5 + $0x1c0] sm:$0xff]  ;;  %v130_v16 = vld [vmem:[#allocation5 + $0x1b8] sm:$0xff] }
  0x50   :  { %485 = vmatpush1.msra.mxu1 %v145_v51  ;;  %415 = vmatprep.subr.mxu0 %v80_v52  ;;  %v195_v15 = vld [vmem:[#allocation5 + $0x3c0] sm:$0xff]  ;;  %v194_v17 = vld [vmem:[#allocation5 + $0x3b8] sm:$0xff]  ;;  %v129_v18 = vld [vmem:[#allocation5 + $0x1b0] sm:$0xff]  ;;  %v1549_v52 = vsub.s32 %v350_v42, %v1546_v41 }
  0x51   :  { %486 = vmatprep.subr.mxu1 %v144_v53  ;;  %416 = vmatpush1.msra.mxu0 %v79_v54  ;;  %v193_v19 = vld [vmem:[#allocation5 + $0x3b0] sm:$0xff]  ;;  %v128_v20 = vld [vmem:[#allocation5 + $0x1a8] sm:$0xff]  ;;  %v127_v22 = vld [vmem:[#allocation5 + $0x1a0] sm:$0xff] }
  0x52   :  { %487 = vmatpush1.msra.mxu1 %v143_v55  ;;  %417 = vmatprep.subr.mxu0 %v78_v56  ;;  %v192_v21 = vld [vmem:[#allocation5 + $0x3a8] sm:$0xff]  ;;  %v191_v23 = vld [vmem:[#allocation5 + $0x3a0] sm:$0xff]  ;;  %v126_v24 = vld [vmem:[#allocation5 + $0x198] sm:$0xff] }
  0x53   :  { %488 = vmatprep.subr.mxu1 %v142_v57  ;;  %418 = vmatpush1.msra.mxu0 %v77_v58  ;;  %v190_v25 = vld [vmem:[#allocation5 + $0x398] sm:$0xff]  ;;  %v125_v26 = vld [vmem:[#allocation5 + $0x190] sm:$0xff]  ;;  %v124_v28 = vld [vmem:[#allocation5 + $0x188] sm:$0xff] }
  0x54   :  { %489 = vmatpush1.msra.mxu1 %v141_v59  ;;  %419 = vmatprep.subr.mxu0 %v76_v60  ;;  %v189_v27 = vld [vmem:[#allocation5 + $0x390] sm:$0xff]  ;;  %v188_v29 = vld [vmem:[#allocation5 + $0x388] sm:$0xff]  ;;  %v123_v33 = vld [vmem:[#allocation5 + $0x180] sm:$0xff] }
  0x55   :  { %490 = vmatprep.subr.mxu1 %v140_v61  ;;  %420 = vmatpush1.msra.mxu0 %v75_v62  ;;  %v187_v34 = vld [vmem:[#allocation5 + $0x380] sm:$0xff]  ;;  %v122_v35 = vld [vmem:[#allocation5 + $0x178] sm:$0xff]  ;;  %v121_v37 = vld [vmem:[#allocation5 + $0x170] sm:$0xff] }
  0x56   :  { %491 = vmatpush1.msra.mxu1 %v139_v63  ;;  %421 = vmatprep.subr.mxu0 %v138_v0  ;;  %v186_v36 = vld [vmem:[#allocation5 + $0x378] sm:$0xff]  ;;  %v185_v38 = vld [vmem:[#allocation5 + $0x370] sm:$0xff]  ;;  %v120_v39 = vld [vmem:[#allocation5 + $0x168] sm:$0xff] }
  0x57   :  { %492 = vmatprep.subr.mxu1 %v202_v1  ;;  %422 = vmatpush2.msra.mxu0 %v137_v2  ;;  %v184_v40 = vld [vmem:[#allocation5 + $0x368] sm:$0xff]  ;;  %v119_v43 = vld [vmem:[#allocation5 + $0x160] sm:$0xff]  ;;  %v118_v45 = vld [vmem:[#allocation5 + $0x158] sm:$0xff] }
  0x58   :  { %493 = vmatpush2.msra.mxu1 %v201_v3  ;;  %423 = vmatprep.subr.mxu0 %v136_v4  ;;  %v183_v44 = vld [vmem:[#allocation5 + $0x360] sm:$0xff]  ;;  %v182_v46 = vld [vmem:[#allocation5 + $0x358] sm:$0xff]  ;;  %v117_v47 = vld [vmem:[#allocation5 + $0x150] sm:$0xff] }
  0x59   :  { %494 = vmatprep.subr.mxu1 %v200_v5  ;;  %424 = vmatpush2.msra.mxu0 %v135_v6  ;;  %v181_v48 = vld [vmem:[#allocation5 + $0x350] sm:$0xff]  ;;  %v116_v50 = vld [vmem:[#allocation5 + $0x148] sm:$0xff]  ;;  %v115_v53 = vld [vmem:[#allocation5 + $0x140] sm:$0xff] }
  0x5a   :  { %495 = vmatpush2.msra.mxu1 %v199_v7  ;;  %425 = vmatprep.subr.mxu0 %v134_v8  ;;  %v331_v49 = vld [vmem:[#allocation2] sm:$0xff]  ;;  %v180_v51 = vld [vmem:[#allocation5 + $0x348] sm:$0xff]  ;;  %v179_v54 = vld [vmem:[#allocation5 + $0x340] sm:$0xff] }
  0x5b   :  { %496 = vmatprep.subr.mxu1 %v198_v9  ;;  %426 = vmatpush2.msra.mxu0 %v133_v10  ;;  %v114_v55 = vld [vmem:[#allocation5 + $0x138] sm:$0xff]  ;;  %v347_v57 = vcombine.high %v331_v49, %v331_v49  ;;  %v113_v58 = vld [vmem:[#allocation5 + $0x130] sm:$0xff]  ;;  %v112_v60 = vld [vmem:[#allocation5 + $0x128] sm:$0xff]  ;;  %v354_v62 = vrot.slane %v331_v49, %v1549_v52 }
  0x5c   :  { %497 = vmatpush2.msra.mxu1 %v197_v11  ;;  %427 = vmatprep.subr.mxu0 %v132_v12  ;;  %v178_v56 = vld [vmem:[#allocation5 + $0x338] sm:$0xff]  ;;  %v177_v59 = vld [vmem:[#allocation5 + $0x330] sm:$0xff]  ;;  %v176_v61 = vld [vmem:[#allocation5 + $0x328] sm:$0xff] }
  0x5d   :  { %498 = vmatprep.subr.mxu1 %v196_v13  ;;  %428 = vmatpush2.msra.mxu0 %v131_v14  ;;  %v111_v63 = vld [vmem:[#allocation5 + $0x120] sm:$0xff]  ;;  %v110_v1 = vld [vmem:[#allocation5 + $0x118] sm:$0xff]  ;;  %v361_v3 = vrot.slane %v347_v57, %v1549_v52  ;;  %v109_v4 = vld [vmem:[#allocation5 + $0x110] sm:$0xff]  ;;  %v362_v8 = vcombine.high %v354_v62, %v354_v62 }
  0x5e   :  { %499 = vmatpush2.msra.mxu1 %v195_v15  ;;  %429 = vmatprep.subr.mxu0 %v130_v16  ;;  %v175_v0 = vld [vmem:[#allocation5 + $0x320] sm:$0xff]  ;;  %v174_v2 = vld [vmem:[#allocation5 + $0x318] sm:$0xff]  ;;  %v173_v5 = vld [vmem:[#allocation5 + $0x310] sm:$0xff] }
  0x5f   :  { %500 = vmatprep.subr.mxu1 %v194_v17  ;;  %430 = vmatpush2.msra.mxu0 %v129_v18  ;;  %v108_v6 = vld [vmem:[#allocation5 + $0x108] sm:$0xff]  ;;  %v107_v9 = vld [vmem:[#allocation5 + $0x100] sm:$0xff]  ;;  %v363_v11 = vcombine.high %v361_v3, %v361_v3  ;;  %v234_v12 = vld [vmem:[#allocation5 + $0x4f8] sm:$0xff] }
  0x60   :  { %501 = vmatpush2.msra.mxu1 %v193_v19  ;;  %431 = vmatprep.subr.mxu0 %v128_v20  ;;  %v172_v7 = vld [vmem:[#allocation5 + $0x308] sm:$0xff]  ;;  %v171_v10 = vld [vmem:[#allocation5 + $0x300] sm:$0xff]  ;;  %v298_v13 = vld [vmem:[#allocation5 + $0x6f8] sm:$0xff] }
  0x61   :  { %502 = vmatprep.subr.mxu1 %v192_v21  ;;  %432 = vmatpush2.msra.mxu0 %v127_v22  ;;  %v233_v14 = vld [vmem:[#allocation5 + $0x4f0] sm:$0xff]  ;;  %v232_v16 = vld [vmem:[#allocation5 + $0x4e8] sm:$0xff]  ;;  %v231_v18 = vld [vmem:[#allocation5 + $0x4e0] sm:$0xff] }
  0x62   :  { %503 = vmatpush2.msra.mxu1 %v191_v23  ;;  %433 = vmatprep.subr.mxu0 %v126_v24  ;;  %v297_v15 = vld [vmem:[#allocation5 + $0x6f0] sm:$0xff]  ;;  %v296_v17 = vld [vmem:[#allocation5 + $0x6e8] sm:$0xff]  ;;  %v295_v19 = vld [vmem:[#allocation5 + $0x6e0] sm:$0xff] }
  0x63   :  { %504 = vmatprep.subr.mxu1 %v190_v25  ;;  %434 = vmatpush2.msra.mxu0 %v125_v26  ;;  %v230_v20 = vld [vmem:[#allocation5 + $0x4d8] sm:$0xff]  ;;  %v229_v22 = vld [vmem:[#allocation5 + $0x4d0] sm:$0xff]  ;;  %v228_v24 = vld [vmem:[#allocation5 + $0x4c8] sm:$0xff] }
  0x64   :  { %505 = vmatpush2.msra.mxu1 %v189_v27  ;;  %435 = vmatprep.subr.mxu0 %v124_v28  ;;  %v294_v21 = vld [vmem:[#allocation5 + $0x6d8] sm:$0xff]  ;;  %v293_v23 = vld [vmem:[#allocation5 + $0x6d0] sm:$0xff]  ;;  %v292_v25 = vld [vmem:[#allocation5 + $0x6c8] sm:$0xff] }
  0x65   :  { %506 = vmatprep.subr.mxu1 %v188_v29  ;;  %436 = vmatpush2.msra.mxu0 %v123_v33  ;;  %v227_v26 = vld [vmem:[#allocation5 + $0x4c0] sm:$0xff]  ;;  %v226_v28 = vld [vmem:[#allocation5 + $0x4b8] sm:$0xff]  ;;  %v225_v30 = vld [vmem:[#allocation5 + $0x4b0] sm:$0xff] }
  0x66   :  { %507 = vmatpush2.msra.mxu1 %v187_v34  ;;  %437 = vmatprep.subr.mxu0 %v122_v35  ;;  %v291_v27 = vld [vmem:[#allocation5 + $0x6c0] sm:$0xff]  ;;  %v290_v29 = vld [vmem:[#allocation5 + $0x6b8] sm:$0xff]  ;;  %v289_v31 = vld [vmem:[#allocation5 + $0x6b0] sm:$0xff] }
  0x67   :  { %508 = vmatprep.subr.mxu1 %v186_v36  ;;  %438 = vmatpush2.msra.mxu0 %v121_v37  ;;  %v224_v32 = vld [vmem:[#allocation5 + $0x4a8] sm:$0xff]  ;;  %v223_v34 = vld [vmem:[#allocation5 + $0x4a0] sm:$0xff]  ;;  %v222_v36 = vld [vmem:[#allocation5 + $0x498] sm:$0xff] }
  0x68   :  { %509 = vmatpush2.msra.mxu1 %v185_v38  ;;  %439 = vmatprep.subr.mxu0 %v120_v39  ;;  %v288_v33 = vld [vmem:[#allocation5 + $0x6a8] sm:$0xff]  ;;  %v287_v35 = vld [vmem:[#allocation5 + $0x6a0] sm:$0xff]  ;;  %v286_v37 = vld [vmem:[#allocation5 + $0x698] sm:$0xff] }
  0x69   :  { %510 = vmatprep.subr.mxu1 %v184_v40  ;;  %440 = vmatpush2.msra.mxu0 %v119_v43  ;;  %v221_v38 = vld [vmem:[#allocation5 + $0x490] sm:$0xff]  ;;  %v220_v40 = vld [vmem:[#allocation5 + $0x488] sm:$0xff]  ;;  %v219_v43 = vld [vmem:[#allocation5 + $0x480] sm:$0xff] }
  0x6a   :  { %511 = vmatpush2.msra.mxu1 %v183_v44  ;;  %441 = vmatprep.subr.mxu0 %v118_v45  ;;  %v285_v39 = vld [vmem:[#allocation5 + $0x690] sm:$0xff]  ;;  %v284_v42 = vld [vmem:[#allocation5 + $0x688] sm:$0xff]  ;;  %v283_v44 = vld [vmem:[#allocation5 + $0x680] sm:$0xff] }
  0x6b   :  { %512 = vmatprep.subr.mxu1 %v182_v46  ;;  %442 = vmatpush2.msra.mxu0 %v117_v47  ;;  %v218_v45 = vld [vmem:[#allocation5 + $0x478] sm:$0xff]  ;;  %v217_v47 = vld [vmem:[#allocation5 + $0x470] sm:$0xff]  ;;  %v216_v49 = vld [vmem:[#allocation5 + $0x468] sm:$0xff] }
  0x6c   :  { %513 = vmatpush2.msra.mxu1 %v181_v48  ;;  %443 = vmatprep.subr.mxu0 %v116_v50  ;;  %v282_v46 = vld [vmem:[#allocation5 + $0x678] sm:$0xff]  ;;  %v281_v48 = vld [vmem:[#allocation5 + $0x670] sm:$0xff]  ;;  %v280_v50 = vld [vmem:[#allocation5 + $0x668] sm:$0xff] }
  0x6d   :  { %514 = vmatprep.subr.mxu1 %v180_v51  ;;  %444 = vmatpush2.msra.mxu0 %v115_v53  ;;  %v215_v51 = vld [vmem:[#allocation5 + $0x460] sm:$0xff]  ;;  %v277_v57 = vld [vmem:[#allocation5 + $0x650] sm:$0xff] }
  0x6e   :  { %515 = vmatpush2.msra.mxu1 %v179_v54  ;;  %445 = vmatprep.subr.mxu0 %v114_v55  ;;  %v279_v53 = vld [vmem:[#allocation5 + $0x660] sm:$0xff]  ;;  %v214_v54 = vld [vmem:[#allocation5 + $0x458] sm:$0xff] }
  0x6f   :  { %516 = vmatprep.subr.mxu1 %v178_v56  ;;  %446 = vmatpush2.msra.mxu0 %v113_v58  ;;  %v278_v55 = vld [vmem:[#allocation5 + $0x658] sm:$0xff]  ;;  %v213_v56 = vld [vmem:[#allocation5 + $0x450] sm:$0xff]  ;;  %v212_v58 = vld [vmem:[#allocation5 + $0x448] sm:$0xff] }
  0x70   :  { %517 = vmatpush2.msra.mxu1 %v177_v59  ;;  %447 = vmatprep.subr.mxu0 %v112_v60  ;;  %v276_v59 = vld [vmem:[#allocation5 + $0x648] sm:$0xff]  ;;  %v211_v60 = vld [vmem:[#allocation5 + $0x440] sm:$0xff] }
  0x71   :  { %518 = vmatprep.subr.mxu1 %v176_v61  ;;  %448 = vmatpush2.msra.mxu0 %v111_v63  ;;  %v275_v61 = vld [vmem:[#allocation5 + $0x640] sm:$0xff]  ;;  %v274_v63 = vld [vmem:[#allocation5 + $0x638] sm:$0xff] }
  0x72   :  { %519 = vmatpush2.msra.mxu1 %v175_v0  ;;  %449 = vmatprep.subr.mxu0 %v110_v1  ;;  %v209_v0 = vld [vmem:[#allocation5 + $0x430] sm:$0xff] }
  0x73   :  { %520 = vmatprep.subr.mxu1 %v174_v2  ;;  %450 = vmatpush2.msra.mxu0 %v109_v4  ;;  %v273_v1 = vld [vmem:[#allocation5 + $0x630] sm:$0xff]  ;;  %v208_v2 = vld [vmem:[#allocation5 + $0x428] sm:$0xff]  ;;  %v207_v4 = vld [vmem:[#allocation5 + $0x420] sm:$0xff] }
  0x74   :  { %521 = vmatpush2.msra.mxu1 %v173_v5  ;;  %451 = vmatprep.subr.mxu0 %v108_v6  ;;  %v271_v5 = vld [vmem:[#allocation5 + $0x620] sm:$0xff]  ;;  %v206_v6 = vld [vmem:[#allocation5 + $0x418] sm:$0xff] }
  0x75   :  { %522 = vmatprep.subr.mxu1 %v172_v7  ;;  %452 = vmatpush2.msra.mxu0 %v107_v9  ;;  %v270_v7 = vld [vmem:[#allocation5 + $0x618] sm:$0xff]  ;;  %v269_v9 = vld [vmem:[#allocation5 + $0x610] sm:$0xff] }
  0x76   :  { %453 = vmatprep.mubr.f32.mxu0 %v362_v8  ;;  %523 = vmatpush2.msra.mxu1 %v171_v10  ;;  %v205_v8 = vld [vmem:[#allocation5 + $0x410] sm:$0xff]  ;;  %v204_v10 = vld [vmem:[#allocation5 + $0x408] sm:$0xff] }
  0x77   :  { %454 = vmatmul.mubr.f32.vlgmr.msra.gmra.mxu0 %v354_v62  ;;  %524 = vmatprep.mubr.f32.mxu1 %v363_v11  ;;  %v210_v62 = vld [vmem:[#allocation5 + $0x438] sm:$0xff]  ;;  %v268_v11 = vld [vmem:[#allocation5 + $0x608] sm:$0xff] }
  0x78   :  { %531 = vmatprep.subr.mxu0 %v234_v12  ;;  %602 = vmatprep.subr.mxu1 %v298_v13  ;;  %v203_v12 = vld [vmem:[#allocation5 + $0x400] sm:$0xff] }
  0x79   :  { %525 = vmatmul.mubr.f32.vlgmr.msra.gmra.mxu1 %v361_v3  ;;  %532 = vmatpush1.msra.mxu0 %v233_v14  ;;  %v272_v3 = vld [vmem:[#allocation5 + $0x628] sm:$0xff]  ;;  %v267_v13 = vld [vmem:[#allocation5 + $0x600] sm:$0xff]  ;;  %v266_v14 = vld [vmem:[#allocation5 + $0x5f8] sm:$0xff] }
  0x7a   :  { %603 = vmatpush1.msra.mxu1 %v297_v15  ;;  %533 = vmatprep.subr.mxu0 %v232_v16  ;;  %v330_v15 = vld [vmem:[#allocation5 + $0x7f8] sm:$0xff]  ;;  %v265_v16 = vld [vmem:[#allocation5 + $0x5f0] sm:$0xff] }
  0x7b   :  { %604 = vmatprep.subr.mxu1 %v296_v17  ;;  %534 = vmatpush1.msra.mxu0 %v231_v18  ;;  %v329_v17 = vld [vmem:[#allocation5 + $0x7f0] sm:$0xff]  ;;  %v264_v18 = vld [vmem:[#allocation5 + $0x5e8] sm:$0xff] }
  0x7c   :  { %605 = vmatpush1.msra.mxu1 %v295_v19  ;;  %535 = vmatprep.subr.mxu0 %v230_v20  ;;  %v328_v19 = vld [vmem:[#allocation5 + $0x7e8] sm:$0xff]  ;;  %v263_v20 = vld [vmem:[#allocation5 + $0x5e0] sm:$0xff] }
  0x7d   :  { %606 = vmatprep.subr.mxu1 %v294_v21  ;;  %536 = vmatpush1.msra.mxu0 %v229_v22  ;;  %v327_v21 = vld [vmem:[#allocation5 + $0x7e0] sm:$0xff]  ;;  %v262_v22 = vld [vmem:[#allocation5 + $0x5d8] sm:$0xff] }
  0x7e   :  { %607 = vmatpush1.msra.mxu1 %v293_v23  ;;  %537 = vmatprep.subr.mxu0 %v228_v24  ;;  %v326_v23 = vld [vmem:[#allocation5 + $0x7d8] sm:$0xff]  ;;  %v261_v24 = vld [vmem:[#allocation5 + $0x5d0] sm:$0xff] }
  0x7f   :  { %608 = vmatprep.subr.mxu1 %v292_v25  ;;  %538 = vmatpush1.msra.mxu0 %v227_v26  ;;  %v325_v25 = vld [vmem:[#allocation5 + $0x7d0] sm:$0xff]  ;;  %v260_v26 = vld [vmem:[#allocation5 + $0x5c8] sm:$0xff] }
  0x80   :  { %609 = vmatpush1.msra.mxu1 %v291_v27  ;;  %539 = vmatprep.subr.mxu0 %v226_v28  ;;  %v324_v27 = vld [vmem:[#allocation5 + $0x7c8] sm:$0xff]  ;;  %v259_v28 = vld [vmem:[#allocation5 + $0x5c0] sm:$0xff] }
  0x81   :  { %610 = vmatprep.subr.mxu1 %v290_v29  ;;  %540 = vmatpush1.msra.mxu0 %v225_v30  ;;  %v323_v29 = vld [vmem:[#allocation5 + $0x7c0] sm:$0xff]  ;;  %v258_v30 = vld [vmem:[#allocation5 + $0x5b8] sm:$0xff] }
  0x82   :  { %611 = vmatpush1.msra.mxu1 %v289_v31  ;;  %541 = vmatprep.subr.mxu0 %v224_v32  ;;  %v322_v31 = vld [vmem:[#allocation5 + $0x7b8] sm:$0xff]  ;;  %v257_v32 = vld [vmem:[#allocation5 + $0x5b0] sm:$0xff] }
  0x83   :  { %612 = vmatprep.subr.mxu1 %v288_v33  ;;  %542 = vmatpush1.msra.mxu0 %v223_v34  ;;  %v321_v33 = vld [vmem:[#allocation5 + $0x7b0] sm:$0xff]  ;;  %v256_v34 = vld [vmem:[#allocation5 + $0x5a8] sm:$0xff] }
  0x84   :  { %613 = vmatpush1.msra.mxu1 %v287_v35  ;;  %543 = vmatprep.subr.mxu0 %v222_v36  ;;  %v320_v35 = vld [vmem:[#allocation5 + $0x7a8] sm:$0xff]  ;;  %v255_v36 = vld [vmem:[#allocation5 + $0x5a0] sm:$0xff] }
  0x85   :  { %614 = vmatprep.subr.mxu1 %v286_v37  ;;  %544 = vmatpush1.msra.mxu0 %v221_v38  ;;  %v319_v37 = vld [vmem:[#allocation5 + $0x7a0] sm:$0xff]  ;;  %v254_v38 = vld [vmem:[#allocation5 + $0x598] sm:$0xff] }
  0x86   :  { %615 = vmatpush1.msra.mxu1 %v285_v39  ;;  %545 = vmatprep.subr.mxu0 %v220_v40  ;;  %v318_v39 = vld [vmem:[#allocation5 + $0x798] sm:$0xff]  ;;  %v253_v40 = vld [vmem:[#allocation5 + $0x590] sm:$0xff] }
  0x87   :  { %616 = vmatprep.subr.mxu1 %v284_v42  ;;  %546 = vmatpush1.msra.mxu0 %v219_v43  ;;  %v317_v42 = vld [vmem:[#allocation5 + $0x790] sm:$0xff]  ;;  %v252_v43 = vld [vmem:[#allocation5 + $0x588] sm:$0xff] }
  0x88   :  { %617 = vmatpush1.msra.mxu1 %v283_v44  ;;  %547 = vmatprep.subr.mxu0 %v218_v45  ;;  %v316_v44 = vld [vmem:[#allocation5 + $0x788] sm:$0xff]  ;;  %v251_v45 = vld [vmem:[#allocation5 + $0x580] sm:$0xff] }
  0x89   :  { %618 = vmatprep.subr.mxu1 %v282_v46  ;;  %548 = vmatpush1.msra.mxu0 %v217_v47  ;;  %v315_v46 = vld [vmem:[#allocation5 + $0x780] sm:$0xff]  ;;  %v250_v47 = vld [vmem:[#allocation5 + $0x578] sm:$0xff] }
  0x8a   :  { %619 = vmatpush1.msra.mxu1 %v281_v48  ;;  %549 = vmatprep.subr.mxu0 %v216_v49  ;;  %v314_v48 = vld [vmem:[#allocation5 + $0x778] sm:$0xff]  ;;  %v249_v49 = vld [vmem:[#allocation5 + $0x570] sm:$0xff] }
  0x8b   :  { %620 = vmatprep.subr.mxu1 %v280_v50  ;;  %550 = vmatpush1.msra.mxu0 %v215_v51  ;;  %v313_v50 = vld [vmem:[#allocation5 + $0x770] sm:$0xff]  ;;  %v248_v51 = vld [vmem:[#allocation5 + $0x568] sm:$0xff] }
  0x8c   :  { %621 = vmatpush1.msra.mxu1 %v279_v53  ;;  %551 = vmatprep.subr.mxu0 %v214_v54  ;;  %v312_v53 = vld [vmem:[#allocation5 + $0x768] sm:$0xff]  ;;  %v247_v54 = vld [vmem:[#allocation5 + $0x560] sm:$0xff] }
  0x8d   :  { %622 = vmatprep.subr.mxu1 %v278_v55  ;;  %552 = vmatpush1.msra.mxu0 %v213_v56  ;;  %v311_v55 = vld [vmem:[#allocation5 + $0x760] sm:$0xff]  ;;  %v246_v56 = vld [vmem:[#allocation5 + $0x558] sm:$0xff] }
  0x8e   :  { %623 = vmatpush1.msra.mxu1 %v277_v57  ;;  %553 = vmatprep.subr.mxu0 %v212_v58  ;;  %v310_v57 = vld [vmem:[#allocation5 + $0x758] sm:$0xff] }
  0x8f   :  { %624 = vmatprep.subr.mxu1 %v276_v59  ;;  %554 = vmatpush1.msra.mxu0 %v211_v60  ;;  %v332_v58 = vld [vmem:[#allocation2 + $0x8] sm:$0xff]  ;;  %v245_v59 = vld [vmem:[#allocation5 + $0x550] sm:$0xff] }
  0x90   :  { %625 = vmatpush1.msra.mxu1 %v275_v61  ;;  %555 = vmatprep.subr.mxu0 %v210_v62  ;;  %v309_v60 = vld [vmem:[#allocation5 + $0x750] sm:$0xff]  ;;  %v244_v61 = vld [vmem:[#allocation5 + $0x548] sm:$0xff] }
  0x91   :  { %626 = vmatprep.subr.mxu1 %v274_v63  ;;  %556 = vmatpush1.msra.mxu0 %v209_v0  ;;  %v308_v62 = vld [vmem:[#allocation5 + $0x748] sm:$0xff]  ;;  %v243_v63 = vld [vmem:[#allocation5 + $0x540] sm:$0xff] }
  0x92   :  { %627 = vmatpush1.msra.mxu1 %v273_v1  ;;  %557 = vmatprep.subr.mxu0 %v208_v2  ;;  %v307_v0 = vld [vmem:[#allocation5 + $0x740] sm:$0xff]  ;;  %v364_v1 = vcombine.high %v332_v58, %v332_v58  ;;  %v242_v2 = vld [vmem:[#allocation5 + $0x538] sm:$0xff] }
  0x93   :  { %628 = vmatprep.subr.mxu1 %v272_v3  ;;  %558 = vmatpush1.msra.mxu0 %v207_v4  ;;  %v306_v3 = vld [vmem:[#allocation5 + $0x738] sm:$0xff]  ;;  %v241_v4 = vld [vmem:[#allocation5 + $0x530] sm:$0xff] }
  0x94   :  { %629 = vmatpush1.msra.mxu1 %v271_v5  ;;  %559 = vmatprep.subr.mxu0 %v206_v6  ;;  %v305_v5 = vld [vmem:[#allocation5 + $0x730] sm:$0xff]  ;;  %v240_v6 = vld [vmem:[#allocation5 + $0x528] sm:$0xff] }
  0x95   :  { %630 = vmatprep.subr.mxu1 %v270_v7  ;;  %560 = vmatpush1.msra.mxu0 %v205_v8  ;;  %v304_v7 = vld [vmem:[#allocation5 + $0x728] sm:$0xff]  ;;  %v371_v8 = vrot.slane %v332_v58, %v1549_v52  ;;  %v741_v58 = vld [vmem:[#allocation7 + $0x1c0] sm:$0xff] }
  0x96   :  { %631 = vmatpush1.msra.mxu1 %v269_v9  ;;  %561 = vmatprep.subr.mxu0 %v204_v10  ;;  %v239_v9 = vld [vmem:[#allocation5 + $0x520] sm:$0xff] }
  0x97   :  { %632 = vmatprep.subr.mxu1 %v268_v11  ;;  %562 = vmatpush1.msra.mxu0 %v203_v12  ;;  %v303_v10 = vld [vmem:[#allocation5 + $0x720] sm:$0xff]  ;;  %v378_v11 = vrot.slane %v364_v1, %v1549_v52  ;;  %v238_v12 = vld [vmem:[#allocation5 + $0x518] sm:$0xff] }
  0x98   :  { %633 = vmatpush1.msra.mxu1 %v267_v13  ;;  %563 = vmatprep.subr.mxu0 %v266_v14  ;;  %v302_v13 = vld [vmem:[#allocation5 + $0x718] sm:$0xff]  ;;  %v237_v14 = vld [vmem:[#allocation5 + $0x510] sm:$0xff] }
  0x99   :  { %634 = vmatprep.subr.mxu1 %v330_v15  ;;  %564 = vmatpush2.msra.mxu0 %v265_v16  ;;  %v301_v15 = vld [vmem:[#allocation5 + $0x710] sm:$0xff]  ;;  %v236_v16 = vld [vmem:[#allocation5 + $0x508] sm:$0xff]  ;;  %v728_v1 = vld [vmem:[#allocation7 + $0x158] sm:$0xff] }
  0x9a   :  { %635 = vmatpush2.msra.mxu1 %v329_v17  ;;  %565 = vmatprep.subr.mxu0 %v264_v18  ;;  %v300_v17 = vld [vmem:[#allocation5 + $0x708] sm:$0xff]  ;;  %v379_v18 = vcombine.high %v371_v8, %v371_v8 }
  0x9b   :  { %636 = vmatprep.subr.mxu1 %v328_v19  ;;  %566 = vmatpush2.msra.mxu0 %v263_v20  ;;  %v235_v19 = vld [vmem:[#allocation5 + $0x500] sm:$0xff]  ;;  %v380_v20 = vcombine.high %v378_v11, %v378_v11 }
  0x9c   :  { %637 = vmatpush2.msra.mxu1 %v327_v21  ;;  %567 = vmatprep.subr.mxu0 %v262_v22  ;;  %v299_v21 = vld [vmem:[#allocation5 + $0x700] sm:$0xff]  ;;  %v806_v22 = vld [vmem:[#allocation7 + $0x3c8] sm:$0xff] }
  0x9d   :  { %638 = vmatprep.subr.mxu1 %v326_v23  ;;  %568 = vmatpush2.msra.mxu0 %v261_v24  ;;  %v808_v23 = vld [vmem:[#allocation7 + $0x3d8] sm:$0xff]  ;;  %v805_v24 = vld [vmem:[#allocation7 + $0x3c0] sm:$0xff] }
  0x9e   :  { %639 = vmatpush2.msra.mxu1 %v325_v25  ;;  %569 = vmatprep.subr.mxu0 %v260_v26  ;;  %v807_v25 = vld [vmem:[#allocation7 + $0x3d0] sm:$0xff]  ;;  %v798_v26 = vld [vmem:[#allocation7 + $0x388] sm:$0xff] }
  0x9f   :  { %640 = vmatprep.subr.mxu1 %v324_v27  ;;  %570 = vmatpush2.msra.mxu0 %v259_v28  ;;  %v800_v27 = vld [vmem:[#allocation7 + $0x398] sm:$0xff]  ;;  %v797_v28 = vld [vmem:[#allocation7 + $0x380] sm:$0xff] }
  0xa0   :  { %641 = vmatpush2.msra.mxu1 %v323_v29  ;;  %571 = vmatprep.subr.mxu0 %v258_v30  ;;  %v799_v29 = vld [vmem:[#allocation7 + $0x390] sm:$0xff]  ;;  %v790_v30 = vld [vmem:[#allocation7 + $0x348] sm:$0xff] }
  0xa1   :  { %642 = vmatprep.subr.mxu1 %v322_v31  ;;  %572 = vmatpush2.msra.mxu0 %v257_v32  ;;  %v792_v31 = vld [vmem:[#allocation7 + $0x358] sm:$0xff]  ;;  %v789_v32 = vld [vmem:[#allocation7 + $0x340] sm:$0xff] }
  0xa2   :  { %643 = vmatpush2.msra.mxu1 %v321_v33  ;;  %573 = vmatprep.subr.mxu0 %v256_v34  ;;  %v791_v33 = vld [vmem:[#allocation7 + $0x350] sm:$0xff]  ;;  %v782_v34 = vld [vmem:[#allocation7 + $0x308] sm:$0xff] }
  0xa3   :  { %644 = vmatprep.subr.mxu1 %v320_v35  ;;  %574 = vmatpush2.msra.mxu0 %v255_v36  ;;  %v784_v35 = vld [vmem:[#allocation7 + $0x318] sm:$0xff]  ;;  %v781_v36 = vld [vmem:[#allocation7 + $0x300] sm:$0xff] }
  0xa4   :  { %645 = vmatpush2.msra.mxu1 %v319_v37  ;;  %575 = vmatprep.subr.mxu0 %v254_v38  ;;  %v783_v37 = vld [vmem:[#allocation7 + $0x310] sm:$0xff]  ;;  %v774_v38 = vld [vmem:[#allocation7 + $0x2c8] sm:$0xff] }
  0xa5   :  { %646 = vmatprep.subr.mxu1 %v318_v39  ;;  %576 = vmatpush2.msra.mxu0 %v253_v40  ;;  %v776_v39 = vld [vmem:[#allocation7 + $0x2d8] sm:$0xff]  ;;  %v773_v40 = vld [vmem:[#allocation7 + $0x2c0] sm:$0xff] }
  0xa6   :  { %647 = vmatpush2.msra.mxu1 %v317_v42  ;;  %577 = vmatprep.subr.mxu0 %v252_v43  ;;  %v775_v42 = vld [vmem:[#allocation7 + $0x2d0] sm:$0xff]  ;;  %v766_v43 = vld [vmem:[#allocation7 + $0x288] sm:$0xff] }
  0xa7   :  { %648 = vmatprep.subr.mxu1 %v316_v44  ;;  %578 = vmatpush2.msra.mxu0 %v251_v45  ;;  %v768_v44 = vld [vmem:[#allocation7 + $0x298] sm:$0xff]  ;;  %v765_v45 = vld [vmem:[#allocation7 + $0x280] sm:$0xff] }
  0xa8   :  { %649 = vmatpush2.msra.mxu1 %v315_v46  ;;  %579 = vmatprep.subr.mxu0 %v250_v47  ;;  %v767_v46 = vld [vmem:[#allocation7 + $0x290] sm:$0xff]  ;;  %v758_v47 = vld [vmem:[#allocation7 + $0x248] sm:$0xff] }
  0xa9   :  { %650 = vmatprep.subr.mxu1 %v314_v48  ;;  %580 = vmatpush2.msra.mxu0 %v249_v49  ;;  %v760_v48 = vld [vmem:[#allocation7 + $0x258] sm:$0xff]  ;;  %v757_v49 = vld [vmem:[#allocation7 + $0x240] sm:$0xff] }
  0xaa   :  { %651 = vmatpush2.msra.mxu1 %v313_v50  ;;  %581 = vmatprep.subr.mxu0 %v248_v51  ;;  %v759_v50 = vld [vmem:[#allocation7 + $0x250] sm:$0xff]  ;;  %v750_v51 = vld [vmem:[#allocation7 + $0x208] sm:$0xff] }
  0xab   :  { %652 = vmatprep.subr.mxu1 %v312_v53  ;;  %582 = vmatpush2.msra.mxu0 %v247_v54  ;;  %v752_v53 = vld [vmem:[#allocation7 + $0x218] sm:$0xff]  ;;  %v749_v54 = vld [vmem:[#allocation7 + $0x200] sm:$0xff] }
  0xac   :  { %653 = vmatpush2.msra.mxu1 %v311_v55  ;;  %583 = vmatprep.subr.mxu0 %v246_v56  ;;  %v751_v55 = vld [vmem:[#allocation7 + $0x210] sm:$0xff]  ;;  %v742_v56 = vld [vmem:[#allocation7 + $0x1c8] sm:$0xff] }
  0xad   :  { %654 = vmatprep.subr.mxu1 %v310_v57  ;;  %584 = vmatpush2.msra.mxu0 %v245_v59  ;;  %v744_v57 = vld [vmem:[#allocation7 + $0x1d8] sm:$0xff]  ;;  %v743_v59 = vld [vmem:[#allocation7 + $0x1d0] sm:$0xff] }
  0xae   :  { %655 = vmatpush2.msra.mxu1 %v309_v60  ;;  %585 = vmatprep.subr.mxu0 %v244_v61  ;;  %v734_v60 = vld [vmem:[#allocation7 + $0x188] sm:$0xff]  ;;  %v736_v61 = vld [vmem:[#allocation7 + $0x198] sm:$0xff] }
  0xaf   :  { %656 = vmatprep.subr.mxu1 %v308_v62  ;;  %586 = vmatpush2.msra.mxu0 %v243_v63  ;;  %v733_v62 = vld [vmem:[#allocation7 + $0x180] sm:$0xff]  ;;  %v735_v63 = vld [vmem:[#allocation7 + $0x190] sm:$0xff] }
  0xb0   :  { %657 = vmatpush2.msra.mxu1 %v307_v0  ;;  %587 = vmatprep.subr.mxu0 %v242_v2  ;;  %v726_v0 = vld [vmem:[#allocation7 + $0x148] sm:$0xff]  ;;  %v725_v2 = vld [vmem:[#allocation7 + $0x140] sm:$0xff] }
  0xb1   :  { %658 = vmatprep.subr.mxu1 %v306_v3  ;;  %588 = vmatpush2.msra.mxu0 %v241_v4  ;;  %v727_v3 = vld [vmem:[#allocation7 + $0x150] sm:$0xff]  ;;  %v718_v4 = vld [vmem:[#allocation7 + $0x108] sm:$0xff] }
  0xb2   :  { %659 = vmatpush2.msra.mxu1 %v305_v5  ;;  %589 = vmatprep.subr.mxu0 %v240_v6  ;;  %v720_v5 = vld [vmem:[#allocation7 + $0x118] sm:$0xff]  ;;  %v717_v6 = vld [vmem:[#allocation7 + $0x100] sm:$0xff] }
  0xb3   :  { %660 = vmatprep.subr.mxu1 %v304_v7  ;;  %590 = vmatpush2.msra.mxu0 %v239_v9  ;;  %v719_v7 = vld [vmem:[#allocation7 + $0x110] sm:$0xff]  ;;  %v712_v9 = vld [vmem:[#allocation7 + $0xd8] sm:$0xff] }
  0xb4   :  { %661 = vmatpush2.msra.mxu1 %v303_v10  ;;  %591 = vmatprep.subr.mxu0 %v238_v12  ;;  %v709_v10 = vld [vmem:[#allocation7 + $0xc0] sm:$0xff]  ;;  %v702_v12 = vld [vmem:[#allocation7 + $0x88] sm:$0xff] }
  0xb5   :  { %662 = vmatprep.subr.mxu1 %v302_v13  ;;  %592 = vmatpush2.msra.mxu0 %v237_v14  ;;  %v704_v13 = vld [vmem:[#allocation7 + $0x98] sm:$0xff]  ;;  %v701_v14 = vld [vmem:[#allocation7 + $0x80] sm:$0xff] }
  0xb6   :  { %663 = vmatpush2.msra.mxu1 %v301_v15  ;;  %593 = vmatprep.subr.mxu0 %v236_v16  ;;  %v703_v15 = vld [vmem:[#allocation7 + $0x90] sm:$0xff]  ;;  %v694_v16 = vld [vmem:[#allocation7 + $0x48] sm:$0xff] }
  0xb7   :  { %664 = vmatprep.subr.mxu1 %v300_v17  ;;  %594 = vmatpush2.msra.mxu0 %v235_v19  ;;  %v696_v17 = vld [vmem:[#allocation7 + $0x58] sm:$0xff]  ;;  %v695_v19 = vld [vmem:[#allocation7 + $0x50] sm:$0xff] }
  0xb8   :  { %595 = vmatprep.mubr.f32.mxu0 %v379_v18  ;;  %665 = vmatpush2.msra.mxu1 %v299_v21  ;;  %v693_v18 = vld [vmem:[#allocation7 + $0x40] sm:$0xff]  ;;  %v688_v21 = vld [vmem:[#allocation7 + $0x18] sm:$0xff] }
  0xb9   :  { %666 = vmatprep.mubr.f32.mxu1 %v380_v20  ;;  %596 = vmatmul.mubr.f32.vlgmr.msra.gmra.mxu0 %v371_v8  ;;  %v710_v8 = vld [vmem:[#allocation7 + $0xc8] sm:$0xff] }
  0xba   :  { %667 = vmatmul.mubr.f32.vlgmr.msra.gmra.mxu1 %v378_v11  ;;  %983 = vmatprep.subr.mxu0 %v806_v22  ;;  %v711_v11 = vld [vmem:[#allocation7 + $0xd0] sm:$0xff]  ;;  %v686_v20 = vld [vmem:[#allocation7 + $0x8] sm:$0xff]  ;;  %v685_v22 = vld [vmem:[#allocation7] sm:$0xff] }
  0xbb   :  { %1054 = vmatprep.subr.mxu1 %v808_v23  ;;  %984 = vmatpush1.msra.mxu0 %v805_v24  ;;  %v687_v23 = vld [vmem:[#allocation7 + $0x10] sm:$0xff]  ;;  %v934_v24 = vld [vmem:[#allocation7 + $0x7c8] sm:$0xff] }
  0xbc   :  { %1055 = vmatpush1.msra.mxu1 %v807_v25  ;;  %985 = vmatprep.subr.mxu0 %v798_v26  ;;  %v936_v25 = vld [vmem:[#allocation7 + $0x7d8] sm:$0xff]  ;;  %v933_v26 = vld [vmem:[#allocation7 + $0x7c0] sm:$0xff] }
  0xbd   :  { %1056 = vmatprep.subr.mxu1 %v800_v27  ;;  %986 = vmatpush1.msra.mxu0 %v797_v28  ;;  %v935_v27 = vld [vmem:[#allocation7 + $0x7d0] sm:$0xff]  ;;  %v926_v28 = vld [vmem:[#allocation7 + $0x788] sm:$0xff] }
  0xbe   :  { %1057 = vmatpush1.msra.mxu1 %v799_v29  ;;  %987 = vmatprep.subr.mxu0 %v790_v30  ;;  %v928_v29 = vld [vmem:[#allocation7 + $0x798] sm:$0xff]  ;;  %v925_v30 = vld [vmem:[#allocation7 + $0x780] sm:$0xff] }
  0xbf   :  { %1058 = vmatprep.subr.mxu1 %v792_v31  ;;  %988 = vmatpush1.msra.mxu0 %v789_v32  ;;  %v927_v31 = vld [vmem:[#allocation7 + $0x790] sm:$0xff]  ;;  %v918_v32 = vld [vmem:[#allocation7 + $0x748] sm:$0xff] }
  0xc0   :  { %1059 = vmatpush1.msra.mxu1 %v791_v33  ;;  %989 = vmatprep.subr.mxu0 %v782_v34  ;;  %v920_v33 = vld [vmem:[#allocation7 + $0x758] sm:$0xff]  ;;  %v917_v34 = vld [vmem:[#allocation7 + $0x740] sm:$0xff] }
  0xc1   :  { %1060 = vmatprep.subr.mxu1 %v784_v35  ;;  %990 = vmatpush1.msra.mxu0 %v781_v36  ;;  %v919_v35 = vld [vmem:[#allocation7 + $0x750] sm:$0xff]  ;;  %v910_v36 = vld [vmem:[#allocation7 + $0x708] sm:$0xff] }
  0xc2   :  { %1061 = vmatpush1.msra.mxu1 %v783_v37  ;;  %991 = vmatprep.subr.mxu0 %v774_v38  ;;  %v912_v37 = vld [vmem:[#allocation7 + $0x718] sm:$0xff]  ;;  %v909_v38 = vld [vmem:[#allocation7 + $0x700] sm:$0xff] }
  0xc3   :  { %1062 = vmatprep.subr.mxu1 %v776_v39  ;;  %992 = vmatpush1.msra.mxu0 %v773_v40  ;;  %v911_v39 = vld [vmem:[#allocation7 + $0x710] sm:$0xff]  ;;  %v902_v40 = vld [vmem:[#allocation7 + $0x6c8] sm:$0xff] }
  0xc4   :  { %1063 = vmatpush1.msra.mxu1 %v775_v42  ;;  %993 = vmatprep.subr.mxu0 %v766_v43  ;;  %v904_v42 = vld [vmem:[#allocation7 + $0x6d8] sm:$0xff]  ;;  %v901_v43 = vld [vmem:[#allocation7 + $0x6c0] sm:$0xff] }
  0xc5   :  { %1064 = vmatprep.subr.mxu1 %v768_v44  ;;  %994 = vmatpush1.msra.mxu0 %v765_v45  ;;  %v903_v44 = vld [vmem:[#allocation7 + $0x6d0] sm:$0xff]  ;;  %v894_v45 = vld [vmem:[#allocation7 + $0x688] sm:$0xff] }
  0xc6   :  { %1065 = vmatpush1.msra.mxu1 %v767_v46  ;;  %995 = vmatprep.subr.mxu0 %v758_v47  ;;  %v896_v46 = vld [vmem:[#allocation7 + $0x698] sm:$0xff]  ;;  %v893_v47 = vld [vmem:[#allocation7 + $0x680] sm:$0xff] }
  0xc7   :  { %1066 = vmatprep.subr.mxu1 %v760_v48  ;;  %996 = vmatpush1.msra.mxu0 %v757_v49  ;;  %v895_v48 = vld [vmem:[#allocation7 + $0x690] sm:$0xff]  ;;  %v886_v49 = vld [vmem:[#allocation7 + $0x648] sm:$0xff] }
  0xc8   :  { %1067 = vmatpush1.msra.mxu1 %v759_v50  ;;  %997 = vmatprep.subr.mxu0 %v750_v51  ;;  %v888_v50 = vld [vmem:[#allocation7 + $0x658] sm:$0xff]  ;;  %v885_v51 = vld [vmem:[#allocation7 + $0x640] sm:$0xff] }
  0xc9   :  { %1068 = vmatprep.subr.mxu1 %v752_v53  ;;  %998 = vmatpush1.msra.mxu0 %v749_v54  ;;  %v887_v53 = vld [vmem:[#allocation7 + $0x650] sm:$0xff]  ;;  %v878_v54 = vld [vmem:[#allocation7 + $0x608] sm:$0xff] }
  0xca   :  { %1069 = vmatpush1.msra.mxu1 %v751_v55  ;;  %999 = vmatprep.subr.mxu0 %v742_v56  ;;  %v880_v55 = vld [vmem:[#allocation7 + $0x618] sm:$0xff]  ;;  %v877_v56 = vld [vmem:[#allocation7 + $0x600] sm:$0xff] }
  0xcb   :  { %1070 = vmatprep.subr.mxu1 %v744_v57  ;;  %1000 = vmatpush1.msra.mxu0 %v741_v58  ;;  %v879_v57 = vld [vmem:[#allocation7 + $0x610] sm:$0xff]  ;;  %v870_v58 = vld [vmem:[#allocation7 + $0x5c8] sm:$0xff] }
  0xcc   :  { %1071 = vmatpush1.msra.mxu1 %v743_v59  ;;  %1001 = vmatprep.subr.mxu0 %v734_v60  ;;  %v872_v59 = vld [vmem:[#allocation7 + $0x5d8] sm:$0xff]  ;;  %v869_v60 = vld [vmem:[#allocation7 + $0x5c0] sm:$0xff] }
  0xcd   :  { %1072 = vmatprep.subr.mxu1 %v736_v61  ;;  %1002 = vmatpush1.msra.mxu0 %v733_v62  ;;  %v871_v61 = vld [vmem:[#allocation7 + $0x5d0] sm:$0xff]  ;;  %v862_v62 = vld [vmem:[#allocation7 + $0x588] sm:$0xff] }
  0xce   :  { %1073 = vmatpush1.msra.mxu1 %v735_v63  ;;  %1003 = vmatprep.subr.mxu0 %v726_v0  ;;  %v864_v63 = vld [vmem:[#allocation7 + $0x598] sm:$0xff]  ;;  %v861_v0 = vld [vmem:[#allocation7 + $0x580] sm:$0xff] }
  0xcf   :  { %1074 = vmatprep.subr.mxu1 %v728_v1  ;;  %1004 = vmatpush1.msra.mxu0 %v725_v2  ;;  %v863_v1 = vld [vmem:[#allocation7 + $0x590] sm:$0xff]  ;;  %v854_v2 = vld [vmem:[#allocation7 + $0x548] sm:$0xff] }
  0xd0   :  { %1075 = vmatpush1.msra.mxu1 %v727_v3  ;;  %1005 = vmatprep.subr.mxu0 %v718_v4  ;;  %v856_v3 = vld [vmem:[#allocation7 + $0x558] sm:$0xff]  ;;  %v853_v4 = vld [vmem:[#allocation7 + $0x540] sm:$0xff] }
  0xd1   :  { %1076 = vmatprep.subr.mxu1 %v720_v5  ;;  %1006 = vmatpush1.msra.mxu0 %v717_v6  ;;  %v855_v5 = vld [vmem:[#allocation7 + $0x550] sm:$0xff]  ;;  %v846_v6 = vld [vmem:[#allocation7 + $0x508] sm:$0xff] }
  0xd2   :  { %1077 = vmatpush1.msra.mxu1 %v719_v7  ;;  %1007 = vmatprep.subr.mxu0 %v710_v8  ;;  %v848_v7 = vld [vmem:[#allocation7 + $0x518] sm:$0xff]  ;;  %v845_v8 = vld [vmem:[#allocation7 + $0x500] sm:$0xff] }
  0xd3   :  { %1078 = vmatprep.subr.mxu1 %v712_v9  ;;  %1008 = vmatpush1.msra.mxu0 %v709_v10  ;;  %v847_v9 = vld [vmem:[#allocation7 + $0x510] sm:$0xff]  ;;  %v838_v10 = vld [vmem:[#allocation7 + $0x4c8] sm:$0xff] }
  0xd4   :  { %1079 = vmatpush1.msra.mxu1 %v711_v11  ;;  %1009 = vmatprep.subr.mxu0 %v702_v12  ;;  %v840_v11 = vld [vmem:[#allocation7 + $0x4d8] sm:$0xff]  ;;  %v837_v12 = vld [vmem:[#allocation7 + $0x4c0] sm:$0xff] }
  0xd5   :  { %1080 = vmatprep.subr.mxu1 %v704_v13  ;;  %1010 = vmatpush1.msra.mxu0 %v701_v14  ;;  %v839_v13 = vld [vmem:[#allocation7 + $0x4d0] sm:$0xff]  ;;  %v830_v14 = vld [vmem:[#allocation7 + $0x488] sm:$0xff] }
  0xd6   :  { %1081 = vmatpush1.msra.mxu1 %v703_v15  ;;  %1011 = vmatprep.subr.mxu0 %v694_v16  ;;  %v832_v15 = vld [vmem:[#allocation7 + $0x498] sm:$0xff]  ;;  %v829_v16 = vld [vmem:[#allocation7 + $0x480] sm:$0xff] }
  0xd7   :  { %1082 = vmatprep.subr.mxu1 %v696_v17  ;;  %1012 = vmatpush1.msra.mxu0 %v693_v18  ;;  %v831_v17 = vld [vmem:[#allocation7 + $0x490] sm:$0xff]  ;;  %v822_v18 = vld [vmem:[#allocation7 + $0x448] sm:$0xff] }
  0xd8   :  { %1083 = vmatpush1.msra.mxu1 %v695_v19  ;;  %1013 = vmatprep.subr.mxu0 %v686_v20  ;;  %v824_v19 = vld [vmem:[#allocation7 + $0x458] sm:$0xff]  ;;  %v821_v20 = vld [vmem:[#allocation7 + $0x440] sm:$0xff] }
  0xd9   :  { %1084 = vmatprep.subr.mxu1 %v688_v21  ;;  %1014 = vmatpush1.msra.mxu0 %v685_v22  ;;  %v823_v21 = vld [vmem:[#allocation7 + $0x450] sm:$0xff]  ;;  %v814_v22 = vld [vmem:[#allocation7 + $0x408] sm:$0xff] }
  0xda   :  { %1085 = vmatpush1.msra.mxu1 %v687_v23  ;;  %1015 = vmatprep.subr.mxu0 %v934_v24  ;;  %v816_v23 = vld [vmem:[#allocation7 + $0x418] sm:$0xff]  ;;  %v813_v24 = vld [vmem:[#allocation7 + $0x400] sm:$0xff] }
  0xdb   :  { %1086 = vmatprep.subr.mxu1 %v936_v25  ;;  %1016 = vmatpush2.msra.mxu0 %v933_v26  ;;  %v815_v25 = vld [vmem:[#allocation7 + $0x410] sm:$0xff]  ;;  %v810_v26 = vld [vmem:[#allocation7 + $0x3e8] sm:$0xff] }
  0xdc   :  { %1087 = vmatpush2.msra.mxu1 %v935_v27  ;;  %1017 = vmatprep.subr.mxu0 %v926_v28  ;;  %v812_v27 = vld [vmem:[#allocation7 + $0x3f8] sm:$0xff]  ;;  %v337_v28 = vsub.s32 0, %v1546_v41 }
  0xdd   :  { %1088 = vmatprep.subr.mxu1 %v928_v29  ;;  %1018 = vmatpush2.msra.mxu0 %v925_v30  ;;  %v333_v29 = vld [vmem:[%s1593_s2] sm:$0x3]  ;;  %v341_v30 = vsub.s32 1, %v1546_v41  ;;  %s1497_s2 = smov [#allocation10]  }
  0xde   :  { %1089 = vmatpush2.msra.mxu1 %v927_v31  ;;  %1019 = vmatprep.subr.mxu0 %v918_v32  ;;  %v338_v32 = vrot.slane %v333_v29, %v337_v28  ;;  %s1319_s19 = sshll.u32 %s1497_s2, 4  ;;  %s1320_s19 = int_to_ptr.vmem [resolvable:$true] %s1319_s19 }
  0xdf   :  { %1090 = vmatprep.subr.mxu1 %v920_v33  ;;  %1020 = vmatpush2.msra.mxu0 %v917_v34  ;;  %v342_v33 = vrot.slane %v333_v29, %v341_v30  ;;  %v729_v29 = vld [vmem:[#allocation7 + $0x160] sm:$0xff]  ;;  %s1438_s20 = scalar_lea.vmem %s1320_s19, 64  ;;  %p1443_p7 = scmp.lt.s32.totalorder %s1320_s19, %s1320_s19 }
  0xe0   :  { %1091 = vmatpush2.msra.mxu1 %v919_v35  ;;  %1021 = vmatprep.subr.mxu0 %v910_v36  ;;  %p1439_p6 = scmp.ne.s32.totalorder %s1320_s19, %s1438_s20  ;;  %p1444_p8 = scmp.lt.s32.totalorder %s1438_s20, %s1438_s20 }
  0xe1   :  { %1092 = vmatprep.subr.mxu1 %v912_v37  ;;  %1022 = vmatpush2.msra.mxu0 %v909_v38 }
  0xe2   :  { %1093 = vmatpush2.msra.mxu1 %v911_v39  ;;  %1023 = vmatprep.subr.mxu0 %v902_v40  ;;  %p1445_p9 = por %p1444_p8, %p1443_p7 }
  0xe3   :  { %1094 = vmatprep.subr.mxu1 %v904_v42  ;;  %1024 = vmatpush2.msra.mxu0 %v901_v43 }
  0xe4   :  { %1095 = vmatpush2.msra.mxu1 %v903_v44  ;;  %1025 = vmatprep.subr.mxu0 %v894_v45  ;;  %p1446_p10 = pnand %p1445_p9, %p1439_p6 }
  0xe5   :  { %1096 = vmatprep.subr.mxu1 %v896_v46  ;;  %1026 = vmatpush2.msra.mxu0 %v893_v47 }
  0xe6   :  { %1097 = vmatpush2.msra.mxu1 %v895_v48  ;;  %1027 = vmatprep.subr.mxu0 %v886_v49 }
  0xe7   :  { %1098 = vmatprep.subr.mxu1 %v888_v50  ;;  %1028 = vmatpush2.msra.mxu0 %v885_v51  ;;  %v809_v50 = vld [vmem:[#allocation7 + $0x3e0] sm:$0xff]  ;;  %v811_v51 = vld [vmem:[#allocation7 + $0x3f0] sm:$0xff] }
  0xe8   :  { %1099 = vmatpush2.msra.mxu1 %v887_v53  ;;  %1029 = vmatprep.subr.mxu0 %v878_v54  ;;  %v802_v53 = vld [vmem:[#allocation7 + $0x3a8] sm:$0xff] }
  0xe9   :  { %1100 = vmatprep.subr.mxu1 %v880_v55  ;;  %1030 = vmatpush2.msra.mxu0 %v877_v56  ;;  %v804_v55 = vld [vmem:[#allocation7 + $0x3b8] sm:$0xff]  ;;  %v801_v56 = vld [vmem:[#allocation7 + $0x3a0] sm:$0xff] }
  0xea   :  { %1101 = vmatpush2.msra.mxu1 %v879_v57  ;;  %1031 = vmatprep.subr.mxu0 %v870_v58  ;;  %v803_v57 = vld [vmem:[#allocation7 + $0x3b0] sm:$0xff]  ;;  %v794_v58 = vld [vmem:[#allocation7 + $0x368] sm:$0xff] }
  0xeb   :  { %1102 = vmatprep.subr.mxu1 %v872_v59  ;;  %1032 = vmatpush2.msra.mxu0 %v869_v60  ;;  %v796_v59 = vld [vmem:[#allocation7 + $0x378] sm:$0xff]  ;;  %v793_v60 = vld [vmem:[#allocation7 + $0x360] sm:$0xff] }
  0xec   :  { %1103 = vmatpush2.msra.mxu1 %v871_v61  ;;  %1033 = vmatprep.subr.mxu0 %v862_v62  ;;  %v795_v61 = vld [vmem:[#allocation7 + $0x370] sm:$0xff]  ;;  %v786_v62 = vld [vmem:[#allocation7 + $0x328] sm:$0xff] }
  0xed   :  { %1104 = vmatprep.subr.mxu1 %v864_v63  ;;  %1034 = vmatpush2.msra.mxu0 %v861_v0  ;;  %v788_v63 = vld [vmem:[#allocation7 + $0x338] sm:$0xff]  ;;  %v785_v0 = vld [vmem:[#allocation7 + $0x320] sm:$0xff] }
  0xee   :  { %1105 = vmatpush2.msra.mxu1 %v863_v1  ;;  %1035 = vmatprep.subr.mxu0 %v854_v2  ;;  %v787_v1 = vld [vmem:[#allocation7 + $0x330] sm:$0xff]  ;;  %v778_v2 = vld [vmem:[#allocation7 + $0x2e8] sm:$0xff] }
  0xef   :  { %1106 = vmatprep.subr.mxu1 %v856_v3  ;;  %1036 = vmatpush2.msra.mxu0 %v853_v4  ;;  %v780_v3 = vld [vmem:[#allocation7 + $0x2f8] sm:$0xff]  ;;  %v777_v4 = vld [vmem:[#allocation7 + $0x2e0] sm:$0xff] }
  0xf0   :  { %1107 = vmatpush2.msra.mxu1 %v855_v5  ;;  %1037 = vmatprep.subr.mxu0 %v846_v6  ;;  %v779_v5 = vld [vmem:[#allocation7 + $0x2f0] sm:$0xff]  ;;  %v770_v6 = vld [vmem:[#allocation7 + $0x2a8] sm:$0xff] }
  0xf1   :  { %1108 = vmatprep.subr.mxu1 %v848_v7  ;;  %1038 = vmatpush2.msra.mxu0 %v845_v8  ;;  %v772_v7 = vld [vmem:[#allocation7 + $0x2b8] sm:$0xff]  ;;  %v769_v8 = vld [vmem:[#allocation7 + $0x2a0] sm:$0xff] }
  0xf2   :  { %1109 = vmatpush2.msra.mxu1 %v847_v9  ;;  %1039 = vmatprep.subr.mxu0 %v838_v10  ;;  %v771_v9 = vld [vmem:[#allocation7 + $0x2b0] sm:$0xff]  ;;  %v762_v10 = vld [vmem:[#allocation7 + $0x268] sm:$0xff] }
  0xf3   :  { %1110 = vmatprep.subr.mxu1 %v840_v11  ;;  %1040 = vmatpush2.msra.mxu0 %v837_v12  ;;  %v764_v11 = vld [vmem:[#allocation7 + $0x278] sm:$0xff]  ;;  %v761_v12 = vld [vmem:[#allocation7 + $0x260] sm:$0xff] }
  0xf4   :  { %1111 = vmatpush2.msra.mxu1 %v839_v13  ;;  %1041 = vmatprep.subr.mxu0 %v830_v14  ;;  %v763_v13 = vld [vmem:[#allocation7 + $0x270] sm:$0xff]  ;;  %v754_v14 = vld [vmem:[#allocation7 + $0x228] sm:$0xff] }
  0xf5   :  { %1112 = vmatprep.subr.mxu1 %v832_v15  ;;  %1042 = vmatpush2.msra.mxu0 %v829_v16  ;;  %v756_v15 = vld [vmem:[#allocation7 + $0x238] sm:$0xff]  ;;  %v753_v16 = vld [vmem:[#allocation7 + $0x220] sm:$0xff] }
  0xf6   :  { %1113 = vmatpush2.msra.mxu1 %v831_v17  ;;  %1043 = vmatprep.subr.mxu0 %v822_v18  ;;  %v755_v17 = vld [vmem:[#allocation7 + $0x230] sm:$0xff]  ;;  %v746_v18 = vld [vmem:[#allocation7 + $0x1e8] sm:$0xff] }
  0xf7   :  { %1114 = vmatprep.subr.mxu1 %v824_v19  ;;  %1044 = vmatpush2.msra.mxu0 %v821_v20  ;;  %v748_v19 = vld [vmem:[#allocation7 + $0x1f8] sm:$0xff]  ;;  %v745_v20 = vld [vmem:[#allocation7 + $0x1e0] sm:$0xff] }
  0xf8   :  { %1115 = vmatpush2.msra.mxu1 %v823_v21  ;;  %1045 = vmatprep.subr.mxu0 %v814_v22  ;;  %v747_v21 = vld [vmem:[#allocation7 + $0x1f0] sm:$0xff]  ;;  %v738_v22 = vld [vmem:[#allocation7 + $0x1a8] sm:$0xff] }
  0xf9   :  { %1116 = vmatprep.subr.mxu1 %v816_v23  ;;  %1046 = vmatpush2.msra.mxu0 %v813_v24  ;;  %v740_v23 = vld [vmem:[#allocation7 + $0x1b8] sm:$0xff]  ;;  %v737_v24 = vld [vmem:[#allocation7 + $0x1a0] sm:$0xff] }
  0xfa   :  { %1117 = vmatpush2.msra.mxu1 %v815_v25  ;;  %1125 = vmatprep.subr.mxu0 %v810_v26  ;;  %v739_v25 = vld [vmem:[#allocation7 + $0x1b0] sm:$0xff]  ;;  %v730_v26 = vld [vmem:[#allocation7 + $0x168] sm:$0xff] }
  0xfb   :  { %1196 = vmatprep.subr.mxu1 %v812_v27  ;;  %v732_v27 = vld [vmem:[#allocation7 + $0x178] sm:$0xff] }
 0x137   :  { %v455_v31 = vpop.f32.mrf.mxu0 }
 0x138   :  { %v456_v36 = vadd.f32 %v455_v31, %v338_v32  ;;  %v731_v31 = vld [vmem:[#allocation7 + $0x170] sm:$0xff]  ;;  %v722_v32 = vld [vmem:[#allocation7 + $0x128] sm:$0xff] }
 0x139   :  { %v526_v34 = vpop.f32.mrf.mxu1  ;;  %v457_v35 = vpop.f32.mrf.mxu0 }
 0x13a   :  { %v458_v37 = vadd.f32 %v457_v35, %v342_v33  ;;  %v527_v39 = vadd.f32 %v526_v34, %v456_v36  ;;  %v724_v33 = vld [vmem:[#allocation7 + $0x138] sm:$0xff]  ;;  %v721_v34 = vld [vmem:[#allocation7 + $0x120] sm:$0xff]  ;;  %v723_v35 = vld [vmem:[#allocation7 + $0x130] sm:$0xff] }
 0x13b   :  { %v528_v38 = vpop.f32.mrf.mxu1  ;;  %v714_v36 = vld [vmem:[#allocation7 + $0xe8] sm:$0xff] }
 0x13c   :  { %v529_v43 = vadd.f32 %v528_v38, %v458_v37  ;;  %v716_v37 = vld [vmem:[#allocation7 + $0xf8] sm:$0xff]  ;;  %v713_v38 = vld [vmem:[#allocation7 + $0xe0] sm:$0xff] }
 0x179   :  { %v597_v40 = vpop.f32.mrf.mxu0 }
 0x17a   :  { %v668_v42 = vpop.f32.mrf.mxu1  ;;  %v598_v44 = vadd.f32 %v597_v40, %v527_v39  ;;  %v715_v39 = vld [vmem:[#allocation7 + $0xf0] sm:$0xff]  ;;  %v706_v40 = vld [vmem:[#allocation7 + $0xa8] sm:$0xff] }
 0x17b   :  { %v599_v45 = vpop.f32.mrf.mxu0 }
 0x17c   :  { %v600_v46 = vadd.f32 %v599_v45, %v529_v43  ;;  %v670_v47 = vpop.f32.mrf.mxu1  ;;  %v1564_v48 = vadd.f32 %v668_v42, %v598_v44  ;;  %v708_v42 = vld [vmem:[#allocation7 + $0xb8] sm:$0xff]  ;;  %v705_v43 = vld [vmem:[#allocation7 + $0xa0] sm:$0xff]  ;;  %v707_v44 = vld [vmem:[#allocation7 + $0xb0] sm:$0xff] }
 0x17d   :  { %v698_v45 = vld [vmem:[#allocation7 + $0x68] sm:$0xff] }
 0x17e   :  { %v671_v49 = vadd.f32 %v670_v47, %v600_v46  ;;  %v700_v46 = vld [vmem:[#allocation7 + $0x78] sm:$0xff]  ;;  %v697_v47 = vld [vmem:[#allocation7 + $0x60] sm:$0xff] }
 0x180   :  { %1047 = vmatprep.mubr.f32.mxu0 %v671_v49  ;;  %1118 = vmatprep.mubr.f32.mxu1 %v671_v49  ;;  %v675_v54 = vcombine.low %v1564_v48, %v671_v49 }
 0x181   :  { %1048 = vmatmul.mubr.f32.vlgmr.msra.gmra.mxu0 %v1564_v48  ;;  %1119 = vmatmul.mubr.f32.vlgmr.msra.gmra.mxu1 %v1564_v48 }
 0x182   :  { %1126 = vmatpush1.msra.mxu0 %v809_v50  ;;  %1197 = vmatpush1.msra.mxu1 %v811_v51  ;;  %1344 = vst.sshfl [vmem:[#allocation10] sm:$0x33 pattern:$0x76325410] %v675_v54  ;;  %v690_v50 = vld [vmem:[#allocation7 + $0x28] sm:$0xff]  ;;  %v692_v51 = vld [vmem:[#allocation7 + $0x38] sm:$0xff] }
 0x183   :  { %1127 = vmatprep.subr.mxu0 %v802_v53  ;;  %1189 = vmatprep.mubr.f32.mxu0 %v671_v49  ;;  %v689_v53 = vld [vmem:[#allocation7 + $0x20] sm:$0xff]  ;;  %v691_v54 = vld [vmem:[#allocation7 + $0x30] sm:$0xff] }
 0x184   :  { %1198 = vmatprep.subr.mxu1 %v804_v55  ;;  %1260 = vmatprep.mubr.f32.mxu1 %v671_v49  ;;  %v699_v49 = vld [vmem:[#allocation7 + $0x70] sm:$0xff]  ;;  %v938_v55 = vld [vmem:[#allocation7 + $0x7e8] sm:$0xff] }
 0x185   :  { %1128 = vmatpush1.msra.mxu0 %v801_v56  ;;  %1199 = vmatpush1.msra.mxu1 %v803_v57  ;;  %v940_v56 = vld [vmem:[#allocation7 + $0x7f8] sm:$0xff]  ;;  %v937_v57 = vld [vmem:[#allocation7 + $0x7e0] sm:$0xff] }
 0x186   :  { %1129 = vmatprep.subr.mxu0 %v794_v58  ;;  %1200 = vmatprep.subr.mxu1 %v796_v59  ;;  %v939_v58 = vld [vmem:[#allocation7 + $0x7f0] sm:$0xff]  ;;  %v930_v59 = vld [vmem:[#allocation7 + $0x7a8] sm:$0xff] }
 0x187   :  { %1130 = vmatpush1.msra.mxu0 %v793_v60  ;;  %1201 = vmatpush1.msra.mxu1 %v795_v61  ;;  %v932_v60 = vld [vmem:[#allocation7 + $0x7b8] sm:$0xff]  ;;  %v929_v61 = vld [vmem:[#allocation7 + $0x7a0] sm:$0xff] }
 0x188   :  { %1131 = vmatprep.subr.mxu0 %v786_v62  ;;  %1202 = vmatprep.subr.mxu1 %v788_v63  ;;  %v931_v62 = vld [vmem:[#allocation7 + $0x7b0] sm:$0xff]  ;;  %v922_v63 = vld [vmem:[#allocation7 + $0x768] sm:$0xff] }
 0x189   :  { %1132 = vmatpush1.msra.mxu0 %v785_v0  ;;  %1203 = vmatpush1.msra.mxu1 %v787_v1  ;;  %v924_v0 = vld [vmem:[#allocation7 + $0x778] sm:$0xff]  ;;  %v921_v1 = vld [vmem:[#allocation7 + $0x760] sm:$0xff] }
 0x18a   :  { %1133 = vmatprep.subr.mxu0 %v778_v2  ;;  %1204 = vmatprep.subr.mxu1 %v780_v3  ;;  %v923_v2 = vld [vmem:[#allocation7 + $0x770] sm:$0xff]  ;;  %v914_v3 = vld [vmem:[#allocation7 + $0x728] sm:$0xff] }
 0x18b   :  { %1134 = vmatpush1.msra.mxu0 %v777_v4  ;;  %1205 = vmatpush1.msra.mxu1 %v779_v5  ;;  %v916_v4 = vld [vmem:[#allocation7 + $0x738] sm:$0xff]  ;;  %v913_v5 = vld [vmem:[#allocation7 + $0x720] sm:$0xff] }
 0x18c   :  { %1135 = vmatprep.subr.mxu0 %v770_v6  ;;  %1206 = vmatprep.subr.mxu1 %v772_v7  ;;  %v915_v6 = vld [vmem:[#allocation7 + $0x730] sm:$0xff]  ;;  %v906_v7 = vld [vmem:[#allocation7 + $0x6e8] sm:$0xff] }
 0x18d   :  { %1136 = vmatpush1.msra.mxu0 %v769_v8  ;;  %1207 = vmatpush1.msra.mxu1 %v771_v9  ;;  %v908_v8 = vld [vmem:[#allocation7 + $0x6f8] sm:$0xff]  ;;  %v905_v9 = vld [vmem:[#allocation7 + $0x6e0] sm:$0xff] }
 0x18e   :  { %1137 = vmatprep.subr.mxu0 %v762_v10  ;;  %1208 = vmatprep.subr.mxu1 %v764_v11  ;;  %v907_v10 = vld [vmem:[#allocation7 + $0x6f0] sm:$0xff]  ;;  %v898_v11 = vld [vmem:[#allocation7 + $0x6a8] sm:$0xff] }
 0x18f   :  { %1138 = vmatpush1.msra.mxu0 %v761_v12  ;;  %1209 = vmatpush1.msra.mxu1 %v763_v13  ;;  %v900_v12 = vld [vmem:[#allocation7 + $0x6b8] sm:$0xff]  ;;  %v897_v13 = vld [vmem:[#allocation7 + $0x6a0] sm:$0xff] }
 0x190   :  { %1139 = vmatprep.subr.mxu0 %v754_v14  ;;  %1210 = vmatprep.subr.mxu1 %v756_v15  ;;  %v899_v14 = vld [vmem:[#allocation7 + $0x6b0] sm:$0xff]  ;;  %v890_v15 = vld [vmem:[#allocation7 + $0x668] sm:$0xff] }
 0x191   :  { %1140 = vmatpush1.msra.mxu0 %v753_v16  ;;  %1211 = vmatpush1.msra.mxu1 %v755_v17  ;;  %v892_v16 = vld [vmem:[#allocation7 + $0x678] sm:$0xff]  ;;  %v889_v17 = vld [vmem:[#allocation7 + $0x660] sm:$0xff] }
 0x192   :  { %1141 = vmatprep.subr.mxu0 %v746_v18  ;;  %1212 = vmatprep.subr.mxu1 %v748_v19  ;;  %v891_v18 = vld [vmem:[#allocation7 + $0x670] sm:$0xff]  ;;  %v882_v19 = vld [vmem:[#allocation7 + $0x628] sm:$0xff] }
 0x193   :  { %1142 = vmatpush1.msra.mxu0 %v745_v20  ;;  %1213 = vmatpush1.msra.mxu1 %v747_v21  ;;  %v884_v20 = vld [vmem:[#allocation7 + $0x638] sm:$0xff]  ;;  %v881_v21 = vld [vmem:[#allocation7 + $0x620] sm:$0xff] }
 0x194   :  { %1143 = vmatprep.subr.mxu0 %v738_v22  ;;  %1214 = vmatprep.subr.mxu1 %v740_v23  ;;  %v883_v22 = vld [vmem:[#allocation7 + $0x630] sm:$0xff]  ;;  %v874_v23 = vld [vmem:[#allocation7 + $0x5e8] sm:$0xff] }
 0x195   :  { %1144 = vmatpush1.msra.mxu0 %v737_v24  ;;  %1215 = vmatpush1.msra.mxu1 %v739_v25  ;;  %v876_v24 = vld [vmem:[#allocation7 + $0x5f8] sm:$0xff]  ;;  %v873_v25 = vld [vmem:[#allocation7 + $0x5e0] sm:$0xff] }
 0x196   :  { %1145 = vmatprep.subr.mxu0 %v730_v26  ;;  %1216 = vmatprep.subr.mxu1 %v732_v27  ;;  %v875_v26 = vld [vmem:[#allocation7 + $0x5f0] sm:$0xff]  ;;  %v866_v27 = vld [vmem:[#allocation7 + $0x5a8] sm:$0xff] }
 0x197   :  { %1146 = vmatpush1.msra.mxu0 %v729_v29  ;;  %1217 = vmatpush1.msra.mxu1 %v731_v31  ;;  %v868_v29 = vld [vmem:[#allocation7 + $0x5b8] sm:$0xff]  ;;  %v865_v31 = vld [vmem:[#allocation7 + $0x5a0] sm:$0xff] }
 0x198   :  { %1147 = vmatprep.subr.mxu0 %v722_v32  ;;  %1218 = vmatprep.subr.mxu1 %v724_v33  ;;  %v867_v32 = vld [vmem:[#allocation7 + $0x5b0] sm:$0xff]  ;;  %v858_v33 = vld [vmem:[#allocation7 + $0x568] sm:$0xff] }
 0x199   :  { %1148 = vmatpush1.msra.mxu0 %v721_v34  ;;  %1219 = vmatpush1.msra.mxu1 %v723_v35  ;;  %v860_v34 = vld [vmem:[#allocation7 + $0x578] sm:$0xff]  ;;  %v857_v35 = vld [vmem:[#allocation7 + $0x560] sm:$0xff] }
 0x19a   :  { %1149 = vmatprep.subr.mxu0 %v714_v36  ;;  %1220 = vmatprep.subr.mxu1 %v716_v37  ;;  %v859_v36 = vld [vmem:[#allocation7 + $0x570] sm:$0xff]  ;;  %v850_v37 = vld [vmem:[#allocation7 + $0x528] sm:$0xff] }
 0x19b   :  { %1150 = vmatpush1.msra.mxu0 %v713_v38  ;;  %1221 = vmatpush1.msra.mxu1 %v715_v39  ;;  %v852_v38 = vld [vmem:[#allocation7 + $0x538] sm:$0xff]  ;;  %v849_v39 = vld [vmem:[#allocation7 + $0x520] sm:$0xff] }
 0x19c   :  { %1151 = vmatprep.subr.mxu0 %v706_v40  ;;  %1222 = vmatprep.subr.mxu1 %v708_v42  ;;  %v851_v40 = vld [vmem:[#allocation7 + $0x530] sm:$0xff]  ;;  %v842_v42 = vld [vmem:[#allocation7 + $0x4e8] sm:$0xff] }
 0x19d   :  { %1152 = vmatpush1.msra.mxu0 %v705_v43  ;;  %1223 = vmatpush1.msra.mxu1 %v707_v44  ;;  %v844_v43 = vld [vmem:[#allocation7 + $0x4f8] sm:$0xff]  ;;  %v841_v44 = vld [vmem:[#allocation7 + $0x4e0] sm:$0xff] }
 0x19e   :  { %1153 = vmatprep.subr.mxu0 %v698_v45  ;;  %1224 = vmatprep.subr.mxu1 %v700_v46  ;;  %v843_v45 = vld [vmem:[#allocation7 + $0x4f0] sm:$0xff]  ;;  %v834_v46 = vld [vmem:[#allocation7 + $0x4a8] sm:$0xff] }
 0x19f   :  { %1154 = vmatpush1.msra.mxu0 %v697_v47  ;;  %1225 = vmatpush1.msra.mxu1 %v699_v49  ;;  %v836_v47 = vld [vmem:[#allocation7 + $0x4b8] sm:$0xff]  ;;  %v833_v49 = vld [vmem:[#allocation7 + $0x4a0] sm:$0xff] }
 0x1a0   :  { %1155 = vmatprep.subr.mxu0 %v690_v50  ;;  %1226 = vmatprep.subr.mxu1 %v692_v51  ;;  %v835_v50 = vld [vmem:[#allocation7 + $0x4b0] sm:$0xff]  ;;  %v826_v51 = vld [vmem:[#allocation7 + $0x468] sm:$0xff] }
 0x1a1   :  { %1156 = vmatpush1.msra.mxu0 %v689_v53  ;;  %1227 = vmatpush1.msra.mxu1 %v691_v54  ;;  %v828_v53 = vld [vmem:[#allocation7 + $0x478] sm:$0xff]  ;;  %v825_v54 = vld [vmem:[#allocation7 + $0x460] sm:$0xff] }
 0x1a2   :  { %1157 = vmatprep.subr.mxu0 %v938_v55  ;;  %1228 = vmatprep.subr.mxu1 %v940_v56  ;;  %v827_v55 = vld [vmem:[#allocation7 + $0x470] sm:$0xff]  ;;  %v818_v56 = vld [vmem:[#allocation7 + $0x428] sm:$0xff] }
 0x1a3   :  { %1158 = vmatpush2.msra.mxu0 %v937_v57  ;;  %1229 = vmatpush2.msra.mxu1 %v939_v58  ;;  %v820_v57 = vld [vmem:[#allocation7 + $0x438] sm:$0xff]  ;;  %v817_v58 = vld [vmem:[#allocation7 + $0x420] sm:$0xff] }
 0x1a4   :  { %1159 = vmatprep.subr.mxu0 %v930_v59  ;;  %1230 = vmatprep.subr.mxu1 %v932_v60  ;;  %v819_v59 = vld [vmem:[#allocation7 + $0x430] sm:$0xff] }
 0x1a5   :  { %1160 = vmatpush2.msra.mxu0 %v929_v61  ;;  %1231 = vmatpush2.msra.mxu1 %v931_v62 }
 0x1a6   :  { %1161 = vmatprep.subr.mxu0 %v922_v63  ;;  %1232 = vmatprep.subr.mxu1 %v924_v0 }
 0x1a7   :  { %1162 = vmatpush2.msra.mxu0 %v921_v1  ;;  %1233 = vmatpush2.msra.mxu1 %v923_v2 }
 0x1a8   :  { %1163 = vmatprep.subr.mxu0 %v914_v3  ;;  %1234 = vmatprep.subr.mxu1 %v916_v4 }
 0x1a9   :  { %1164 = vmatpush2.msra.mxu0 %v913_v5  ;;  %1235 = vmatpush2.msra.mxu1 %v915_v6 }
 0x1aa   :  { %1165 = vmatprep.subr.mxu0 %v906_v7  ;;  %1236 = vmatprep.subr.mxu1 %v908_v8 }
 0x1ab   :  { %1166 = vmatpush2.msra.mxu0 %v905_v9  ;;  %1237 = vmatpush2.msra.mxu1 %v907_v10 }
 0x1ac   :  { %1167 = vmatprep.subr.mxu0 %v898_v11  ;;  %1238 = vmatprep.subr.mxu1 %v900_v12 }
 0x1ad   :  { %1168 = vmatpush2.msra.mxu0 %v897_v13  ;;  %1239 = vmatpush2.msra.mxu1 %v899_v14 }
 0x1ae   :  { %1169 = vmatprep.subr.mxu0 %v890_v15  ;;  %1240 = vmatprep.subr.mxu1 %v892_v16 }
 0x1af   :  { %1170 = vmatpush2.msra.mxu0 %v889_v17  ;;  %1241 = vmatpush2.msra.mxu1 %v891_v18 }
 0x1b0   :  { %1171 = vmatprep.subr.mxu0 %v882_v19  ;;  %1242 = vmatprep.subr.mxu1 %v884_v20 }
 0x1b1   :  { %1172 = vmatpush2.msra.mxu0 %v881_v21  ;;  %1243 = vmatpush2.msra.mxu1 %v883_v22 }
 0x1b2   :  { %1173 = vmatprep.subr.mxu0 %v874_v23  ;;  %1244 = vmatprep.subr.mxu1 %v876_v24 }
 0x1b3   :  { %1174 = vmatpush2.msra.mxu0 %v873_v25  ;;  %1245 = vmatpush2.msra.mxu1 %v875_v26 }
 0x1b4   :  { %1175 = vmatprep.subr.mxu0 %v866_v27  ;;  %1246 = vmatprep.subr.mxu1 %v868_v29 }
 0x1b5   :  { %1176 = vmatpush2.msra.mxu0 %v865_v31  ;;  %1247 = vmatpush2.msra.mxu1 %v867_v32 }
 0x1b6   :  { %1177 = vmatprep.subr.mxu0 %v858_v33  ;;  %1248 = vmatprep.subr.mxu1 %v860_v34 }
 0x1b7   :  { %1178 = vmatpush2.msra.mxu0 %v857_v35  ;;  %1249 = vmatpush2.msra.mxu1 %v859_v36 }
 0x1b8   :  { %1179 = vmatprep.subr.mxu0 %v850_v37  ;;  %1250 = vmatprep.subr.mxu1 %v852_v38 }
 0x1b9   :  { %1180 = vmatpush2.msra.mxu0 %v849_v39  ;;  %1251 = vmatpush2.msra.mxu1 %v851_v40 }
 0x1ba   :  { %1181 = vmatprep.subr.mxu0 %v842_v42  ;;  %1252 = vmatprep.subr.mxu1 %v844_v43 }
 0x1bb   :  { %1182 = vmatpush2.msra.mxu0 %v841_v44  ;;  %1253 = vmatpush2.msra.mxu1 %v843_v45 }
 0x1bc   :  { %1183 = vmatprep.subr.mxu0 %v834_v46  ;;  %1254 = vmatprep.subr.mxu1 %v836_v47 }
 0x1bd   :  { %1184 = vmatpush2.msra.mxu0 %v833_v49  ;;  %1255 = vmatpush2.msra.mxu1 %v835_v50 }
 0x1be   :  { %1185 = vmatprep.subr.mxu0 %v826_v51  ;;  %1256 = vmatprep.subr.mxu1 %v828_v53 }
 0x1bf   :  { %1186 = vmatpush2.msra.mxu0 %v825_v54  ;;  %1257 = vmatpush2.msra.mxu1 %v827_v55 }
 0x1c0   :  { %1187 = vmatprep.subr.mxu0 %v818_v56  ;;  %1258 = vmatprep.subr.mxu1 %v820_v57 }
 0x1c1   :  { %1188 = vmatpush2.msra.mxu0 %v817_v58  ;;  %1259 = vmatpush2.msra.mxu1 %v819_v59 }
 0x1c2   :  { %1190 = vmatmul.mubr.f32.vlgmr.msra.gmra.mxu0 %v1564_v48  ;;  %1261 = vmatmul.mubr.f32.vlgmr.msra.gmra.mxu1 %v1564_v48 }
 0x1c3   :  { %1449 = shalt.err (!%p1446_p10)
}
 0x1c4   :  { %1322 = dma.vmem_to_hbm [thread:$0]  %s1320_s19, 64, %s1596_s5, [#allocation4]   ;;  %v953_v60 = vsub.s32 2, %v1546_v41  ;;  %v957_v61 = vsub.s32 3, %v1546_v41  ;;  %v941_v62 = vld [vmem:[#allocation8] sm:$0xff]  ;;  %v961_v14 = vsub.s32 4, %v1546_v41 }
 0x1c5   :  { %v946_v48 = vrot.slane %v941_v62, %v337_v28  ;;  %v950_v0 = vrot.slane %v941_v62, %v341_v30  ;;  %v969_v30 = vsub.s32 6, %v1546_v41  ;;  %v965_v15 = vsub.s32 5, %v1546_v41  ;;  %s1498_s5 = smov [#allocation11]  }
 0x1c6   :  { %v954_v63 = vrot.slane %v941_v62, %v953_v60  ;;  %v958_v1 = vrot.slane %v941_v62, %v957_v61  ;;  %v973_v16 = vsub.s32 7, %v1546_v41  ;;  %v962_v17 = vrot.slane %v941_v62, %v961_v14  ;;  %s1329_s23 = sshll.u32 %s1498_s5, 4  ;;  %s1330_s23 = int_to_ptr.vmem [resolvable:$true] %s1329_s23 }
 0x1c7   :  { %v970_v18 = vrot.slane %v941_v62, %v969_v30  ;;  %v966_v19 = vrot.slane %v941_v62, %v965_v15  ;;  %s1458_s24 = scalar_lea.vmem %s1330_s23, 256  ;;  %p1463_p12 = scmp.lt.s32.totalorder %s1330_s23, %s1330_s23 }
 0x1c8   :  { %v974_v20 = vrot.slane %v941_v62, %v973_v16  ;;  %p1459_p11 = scmp.ne.s32.totalorder %s1330_s23, %s1458_s24  ;;  %p1464_p13 = scmp.lt.s32.totalorder %s1458_s24, %s1458_s24 }
 0x1ca   :  { %p1465_p0 = por %p1464_p13, %p1463_p12 }
 0x1cc   :  { %p1466_p1 = pnand %p1465_p0, %p1459_p11 }
 0x241   :  { %v1049_v2 = vpop.f32.mrf.mxu0  ;;  %v1120_v3 = vpop.f32.mrf.mxu1 }
 0x242   :  { %v1050_v6 = vadd.f32 %v1049_v2, %v946_v48  ;;  %v1121_v7 = vadd.f32 %v1120_v3, %v954_v63 }
 0x243   :  { %v1051_v4 = vpop.f32.mrf.mxu0  ;;  %v1122_v5 = vpop.f32.mrf.mxu1 }
 0x244   :  { %v1052_v8 = vadd.f32 %v1051_v4, %v950_v0  ;;  %v1123_v9 = vadd.f32 %v1122_v5, %v958_v1 }
 0x246   :  { %v1275_v10 = vcombine.low %v1050_v6, %v1052_v8  ;;  %v1276_v11 = vcombine.low %v1121_v7, %v1123_v9 }
 0x248   :  { %v1283_v12 = vrot.slane %v1275_v10, %v1549_v52  ;;  %v1290_v13 = vrot.slane %v1276_v11, %v1549_v52 }
 0x24a   :  { %v1291_v28 = vcombine.low %v1283_v12, %v1290_v13 }
 0x24c   :  { %1311 = vst [vmem:[#allocation11] sm:$0xff] %v1291_v28 }
 0x282   :  { %v1191_v21 = vpop.f32.mrf.mxu0  ;;  %v1262_v22 = vpop.f32.mrf.mxu1 }
 0x283   :  { %v1192_v25 = vadd.f32 %v1191_v21, %v962_v17  ;;  %v1263_v26 = vadd.f32 %v1262_v22, %v970_v18 }
 0x284   :  { %v1193_v23 = vpop.f32.mrf.mxu0  ;;  %v1264_v24 = vpop.f32.mrf.mxu1 }
 0x285   :  { %v1194_v27 = vadd.f32 %v1193_v23, %v966_v19  ;;  %v1265_v29 = vadd.f32 %v1264_v24, %v974_v20 }
 0x287   :  { %v1292_v31 = vcombine.low %v1192_v25, %v1194_v27  ;;  %v1293_v32 = vcombine.low %v1263_v26, %v1265_v29 }
 0x289   :  { %v1300_v33 = vrot.slane %v1292_v31, %v1549_v52  ;;  %v1307_v41 = vrot.slane %v1293_v32, %v1549_v52 }
 0x28b   :  { %v1308_v34 = vcombine.low %v1300_v33, %v1307_v41 }
 0x28d   :  { %1312 = vst [vmem:[#allocation11 + $0x8] sm:$0xff] %v1308_v34 }
 0x28e   :  { %1469 = shalt.err (!%p1466_p1)
}
 0x28f   :  { %1332 = dma.vmem_to_hbm [thread:$0]  %s1330_s23, 256, %s1597_s6, [#allocation12]  }
 0x290   :  { %1484 = dma.done.wait [#allocation4], 64  }
 0x291   :  { %1485 = vsyncadd [#allocation4], 4294967232 }
 0x292   :  { %1486 = dma.done.wait [#allocation12], 256  }
 0x293   :  { %1487 = vsyncadd [#allocation12], 4294967040 }
 0x294   :  { %1339 = vsyncpa [#allocation3], 1 }
 0x295   :  { %1340 = vsyncpa [#allocation6], 1 }
 0x296   :  { %1341 = vsyncpa [#allocation9], 1 }
 0x297   :  { %1342 = vsyncpa [#allocation4], 1 }
 0x298   :  { %1343 = vsyncpa [#allocation12], 1 }

</bundles_post_ra>
